<compile_context>
chip_gen: v7x
topology: tpu7x:2x2x1
jax: 0.10.0
libtpu: 0.0.40
codegen_flags: <defaults>
</compile_context>

<pallas_src>
import functools

import jax
import jax.numpy as jnp
from jax.experimental import pallas as pl
from jax.experimental.pallas import tpu as pltpu


def _shortcut_kernel(x_ref, *refs, r, apply_conv):
    """Fused avg-pool (kernel == stride == r) + optional 1x1 conv on one tile.

    x_ref : (1, Cin, TH*r, Wp*r)   NCHW tile (H on sublanes, W on lanes)
    w_ref : (Cout, Cin)            only present when apply_conv
    o_ref : (1, Cout, TH, Wp)
    """
    if apply_conv:
        w_ref, o_ref = refs
    else:
        (o_ref,) = refs

    _, Cin, THr, Wr = x_ref.shape
    TH, Wp = THr // r, Wr // r

    # Dense tile load (no strided ref indexing); pooling accumulates in f32.
    x = x_ref[...].reshape(Cin, THr, Wr).astype(jnp.float32)

    if r > 1:
        # Split H -> (TH, r) and W -> (Wp, r); sum the r*r taps with static
        # value-level indexing, then scale once (count_include_pad=True).
        xr = x.reshape(Cin, TH, r, Wp, r)
        acc = None
        for i in range(r):
            for j in range(r):
                tap = xr[:, :, i, :, j]                     # (Cin, TH, Wp)
                acc = tap if acc is None else acc + tap
        pooled = acc * (1.0 / float(r * r))
    else:
        pooled = x                                          # (Cin, TH, Wp)

    if apply_conv:
        # 1x1 conv as W(Cout, Cin) @ X(Cin, TH*Wp): the large spatial dim sits
        # on the MXU lane axis and the result is already in NCHW store layout.
        w = w_ref[...].astype(jnp.float32)
        y = jnp.dot(w, pooled.reshape(Cin, TH * Wp),
                    preferred_element_type=jnp.float32)
        y = y.reshape(w.shape[0], TH, Wp)
    else:
        y = pooled

    o_ref[...] = y.reshape(o_ref.shape).astype(o_ref.dtype)


def _round_up(v, m):
    return -(-v // m) * m


def _vmem_capacity_bytes():
    try:
        return int(pltpu.get_tpu_info().vmem_capacity_bytes)
    except Exception:
        # No TPU visible at trace time (e.g. interpret mode): assume the
        # smallest per-core VMEM of the supported generations (v7x, 64 MiB).
        return 64 * 1024 * 1024


def _choose_tile_h(Hp, r, Wp, Cin, Cout, itemsize, budget_bytes, prefer_split):
    """Largest tile height TH such that Hp % TH == 0, the blocks respect the
    (8,128) layout rule (TH == Hp or TH % 8 == 0), and the double-buffered,
    (8,128)-PADDED in+out blocks fit `budget_bytes`."""
    Wr = Wp * r

    def padded_block_bytes(th):
        in_b = Cin * _round_up(th * r, 8) * _round_up(Wr, 128) * itemsize
        out_b = Cout * _round_up(th, 8) * _round_up(Wp, 128) * itemsize
        return 2 * (in_b + out_b)           # double-buffered by the pipeline

    cands = [t for t in range(1, Hp + 1)
             if Hp % t == 0 and (t == Hp or t % 8 == 0)]
    fitting = [t for t in cands if padded_block_bytes(t) <= budget_bytes]
    if fitting:
        if prefer_split:                    # keep both v7x TensorCores busy
            split = [t for t in fitting if Hp // t >= 2]
            if split:
                return max(split)
        return max(fitting)
    # TODO(synk): for awkward Hp with no fitting divisor, switch to a cdiv grid
    # with a masked tail tile instead of falling back to the smallest divisor.
    return min(cands)


def shortcut_layer(x, conv_weight, in_channels, out_channels, reduction=1):
    """ShortcutLayer.forward on an NCHW tensor (matches the PyTorch module)."""
    N, C, H, W = x.shape
    assert C == in_channels
    r = int(reduction)
    apply_conv = (in_channels != out_channels)

    if r == 1 and not apply_conv:
        return x                                 # IdentityShortcut: no kernel

    if r > 1:
        # PyTorch rule: padding decided from W parity only, applied to BOTH
        # spatial dims; count_include_pad=True keeps the divisor at r*r.
        pad = 0 if (W % 2 == 0) else 1
        Hp = (H + 2 * pad - r) // r + 1
        Wp = (W + 2 * pad - r) // r + 1
        if pad > 0:
            # TODO(synk): fold the odd-W zero padding into the kernel (masked
            # edge windows) to avoid this extra HBM pass; the common even-W
            # OFA case pays nothing here.
            x = jnp.pad(x, ((0, 0), (0, 0), (pad, pad), (pad, pad)))
        if x.shape[2] != Hp * r or x.shape[3] != Wp * r:
            # Rows/cols past the last full window never contribute; crop so
            # block dims equal the array dims ((8,128) layout rule).
            x = x[:, :, :Hp * r, :Wp * r]
    else:
        Hp, Wp = H, W

    Cout = out_channels if apply_conv else in_channels
    Wr = Wp * r

    vmem_cap = _vmem_capacity_bytes()
    TH = _choose_tile_h(Hp, r, Wp, in_channels, Cout, x.dtype.itemsize,
                        budget_bytes=vmem_cap // 3, prefer_split=(N == 1))
    n_th = Hp // TH

    in_specs = [pl.BlockSpec((1, in_channels, TH * r, Wr),
                             lambda n, h: (n, 0, h, 0))]
    args = [x]
    if apply_conv:
        # (Cout, Cin, 1, 1) -> (Cout, Cin), kept in f32 so the whole
        # pool + conv chain accumulates in f32 (matches the reference).
        w = conv_weight.reshape(out_channels, in_channels).astype(jnp.float32)
        in_specs.append(pl.BlockSpec((out_channels, in_channels),
                                     lambda n, h: (0, 0)))
        args.append(w)

    out_shape = jax.ShapeDtypeStruct((N, Cout, Hp, Wp), x.dtype)
    out_spec = pl.BlockSpec((1, Cout, TH, Wp), lambda n, h: (n, 0, h, 0))

    kernel = functools.partial(_shortcut_kernel, r=r, apply_conv=apply_conv)

    return pl.pallas_call(
        kernel,
        out_shape=out_shape,
        grid=(N, n_th),
        in_specs=in_specs,
        out_specs=out_spec,
        compiler_params=pltpu.CompilerParams(
            dimension_semantics=("parallel", "parallel"),
            vmem_limit_bytes=int(vmem_cap * 3 // 4)),
    )(*args)


def _reference(x_nchw, conv_weight, in_channels, out_channels, reduction):
    """Plain-JAX reference for verification (mirrors the PyTorch module)."""
    x = x_nchw.astype(jnp.float32)
    N, C, H, W = x.shape
    r = int(reduction)
    if r > 1:
        pad = 0 if (W % 2 == 0) else 1
        Hp = (H + 2 * pad - r) // r + 1
        Wp = (W + 2 * pad - r) // r + 1
        if pad > 0:
            x = jnp.pad(x, ((0, 0), (0, 0), (pad, pad), (pad, pad)))
        x = x[:, :, :Hp * r, :Wp * r]
        x = x.reshape(N, C, Hp, r, Wp, r).mean(axis=(3, 5))
    if in_channels != out_channels:
        w = conv_weight.reshape(out_channels, in_channels).astype(jnp.float32)
        x = jnp.einsum("nchw,oc->nohw", x, w)
    return x


if __name__ == "__main__":
    key = jax.random.PRNGKey(0)
    kx, kw = jax.random.split(key)

    # Module config: in_channels=4, out_channels=8, reduction=2 (pool + 1x1).
    in_channels, out_channels, reduction = 4, 8, 2
    x = jax.random.normal(kx, (2, in_channels, 16, 16), dtype=jnp.float32)
    conv_weight = 0.1 * jax.random.normal(
        kw, (out_channels, in_channels, 1, 1), dtype=jnp.float32)

    out = shortcut_layer(x, conv_weight, in_channels, out_channels, reduction)
    out = jax.block_until_ready(out)
    ref = _reference(x, conv_weight, in_channels, out_channels, reduction)
    assert out.shape == ref.shape, (out.shape, ref.shape)
    assert jnp.allclose(out, ref, atol=1e-5, rtol=1e-5), "pool+conv mismatch"

    # Exercise the other kernel branches: pool-only (Cin == Cout) and
    # conv-only (reduction == 1).
    x8 = jax.random.normal(kx, (2, 8, 16, 16), dtype=jnp.float32)
    out2 = jax.block_until_ready(shortcut_layer(x8, None, 8, 8, 2))
    ref2 = _reference(x8, None, 8, 8, 2)
    assert jnp.allclose(out2, ref2, atol=1e-5, rtol=1e-5), "pool-only mismatch"

    out3 = jax.block_until_ready(
        shortcut_layer(x, conv_weight, in_channels, out_channels, 1))
    ref3 = _reference(x, conv_weight, in_channels, out_channels, 1)
    assert jnp.allclose(out3, ref3, atol=1e-5, rtol=1e-5), "conv-only mismatch"

    print("KERNEL_OK")
</pallas_src>

<mosaic_0001>
module attributes {stable_mosaic.version = 11 : i64} {
  func.func @_shortcut_kernel(%arg0: i32, %arg1: i32, %arg2: memref<1x4x16x16xf32, #tpu.memory_space<vmem>>, %arg3: memref<8x4xf32, #tpu.memory_space<vmem>>, %arg4: memref<1x8x8x8xf32, #tpu.memory_space<vmem>>) attributes {dimension_semantics = [#tpu.dimension_semantics<parallel>, #tpu.dimension_semantics<parallel>], iteration_bounds = array<i64: 2, 1>, scalar_prefetch = 0 : i64, scratch_operands = 0 : i64, tpu.core_type = #tpu.core_type<tc>, window_params = [{transform_indices = @transform_0, window_bounds = array<i64: 1, 4, 16, 16>}, {pipeline_mode = #tpu.pipeline_mode<synchronous>, transform_indices = @transform_1, window_bounds = array<i64: 8, 4>}, {transform_indices = @transform_2, window_bounds = array<i64: 1, 8, 8, 8>}]} {
    %c0 = arith.constant 0 : index
    %c0_0 = arith.constant 0 : index
    %c0_1 = arith.constant 0 : index
    %c0_2 = arith.constant 0 : index
    %0 = vector.load %arg2[%c0, %c0_0, %c0_1, %c0_2] : memref<1x4x16x16xf32, #tpu.memory_space<vmem>>, vector<1x4x16x16xf32>
    %1 = vector.shape_cast %0 : vector<1x4x16x16xf32> to vector<4x16x16xf32>
    %2 = vector.shape_cast %1 : vector<4x16x16xf32> to vector<4x8x2x8x2xf32>
    %3 = vector.extract_strided_slice %2 {offsets = [0, 0, 0, 0, 0], sizes = [4, 8, 1, 8, 1], strides = [1, 1, 1, 1, 1]} : vector<4x8x2x8x2xf32> to vector<4x8x1x8x1xf32>
    %4 = vector.shape_cast %3 : vector<4x8x1x8x1xf32> to vector<4x8x8xf32>
    %5 = vector.extract_strided_slice %2 {offsets = [0, 0, 0, 0, 1], sizes = [4, 8, 1, 8, 1], strides = [1, 1, 1, 1, 1]} : vector<4x8x2x8x2xf32> to vector<4x8x1x8x1xf32>
    %6 = vector.shape_cast %5 : vector<4x8x1x8x1xf32> to vector<4x8x8xf32>
    %7 = arith.addf %4, %6 : vector<4x8x8xf32>
    %8 = vector.extract_strided_slice %2 {offsets = [0, 0, 1, 0, 0], sizes = [4, 8, 1, 8, 1], strides = [1, 1, 1, 1, 1]} : vector<4x8x2x8x2xf32> to vector<4x8x1x8x1xf32>
    %9 = vector.shape_cast %8 : vector<4x8x1x8x1xf32> to vector<4x8x8xf32>
    %10 = arith.addf %7, %9 : vector<4x8x8xf32>
    %11 = vector.extract_strided_slice %2 {offsets = [0, 0, 1, 0, 1], sizes = [4, 8, 1, 8, 1], strides = [1, 1, 1, 1, 1]} : vector<4x8x2x8x2xf32> to vector<4x8x1x8x1xf32>
    %12 = vector.shape_cast %11 : vector<4x8x1x8x1xf32> to vector<4x8x8xf32>
    %13 = arith.addf %10, %12 : vector<4x8x8xf32>
    %cst = arith.constant 2.500000e-01 : f32
    %14 = vector.broadcast %cst : f32 to vector<4x8x8xf32>
    %15 = arith.mulf %13, %14 : vector<4x8x8xf32>
    %c0_3 = arith.constant 0 : index
    %c0_4 = arith.constant 0 : index
    %16 = vector.load %arg3[%c0_3, %c0_4] : memref<8x4xf32, #tpu.memory_space<vmem>>, vector<8x4xf32>
    %17 = vector.shape_cast %15 : vector<4x8x8xf32> to vector<4x64xf32>
    %cst_5 = arith.constant dense<0.000000e+00> : vector<8x64xf32>
    %18 = tpu.matmul %16, %17, %cst_5 {dimension_numbers = #tpu.dot_dimension_numbers<[1], [0], [0], [1], [0, 0, 1, 1], [], []>} : vector<8x4xf32>, vector<4x64xf32>, vector<8x64xf32> -> vector<8x64xf32>
    %19 = vector.shape_cast %18 : vector<8x64xf32> to vector<8x8x8xf32>
    %20 = vector.shape_cast %19 : vector<8x8x8xf32> to vector<1x8x8x8xf32>
    %c0_6 = arith.constant 0 : index
    %c0_7 = arith.constant 0 : index
    %c0_8 = arith.constant 0 : index
    %c0_9 = arith.constant 0 : index
    %21 = vector.load %arg4[%c0_6, %c0_7, %c0_8, %c0_9] : memref<1x8x8x8xf32, #tpu.memory_space<vmem>>, vector<1x8x8x8xf32>
    tpu.vector_store %arg4[%c0_6, %c0_7, %c0_8, %c0_9], %20 {strides = array<i32>} : memref<1x8x8x8xf32, #tpu.memory_space<vmem>>, vector<1x8x8x8xf32>,
    return
  }
  func.func @transform_0(%arg0: i32, %arg1: i32) -> (i32, i32, i32, i32) {
    %c0_i32 = arith.constant 0 : i32
    %c0_i32_0 = arith.constant 0 : i32
    %c0_i32_1 = arith.constant 0 : i32
    return %arg0, %c0_i32, %arg1, %c0_i32_0 : i32, i32, i32, i32
  }
  func.func @transform_1(%arg0: i32, %arg1: i32) -> (i32, i32) {
    %c0_i32 = arith.constant 0 : i32
    %c0_i32_0 = arith.constant 0 : i32
    %c0_i32_1 = arith.constant 0 : i32
    return %c0_i32, %c0_i32_0 : i32, i32
  }
  func.func @transform_2(%arg0: i32, %arg1: i32) -> (i32, i32, i32, i32) {
    %c0_i32 = arith.constant 0 : i32
    %c0_i32_0 = arith.constant 0 : i32
    %c0_i32_1 = arith.constant 0 : i32
    return %arg0, %c0_i32, %arg1, %c0_i32_0 : i32, i32, i32, i32
  }
}

</mosaic_0001>

<bundles_post_ra>
// kernel: tpu_custom_call.1
= control target key start
LH: loop header
LB: loop body
LE: loop exit
PB: predicated region body
PF: predicated region fallthrough
CT: control target
= control target key end

     0   :  { %7 = vsyncpa [#allocation3], 0  ;;  %s4163_s0 = inlined_call_operand.hbm [shape: f32[2,4,16,16], index: 0, kind: input, shape index: {}]   ;;  %s4164_s1 = inlined_call_operand.vmem [shape: f32[8,4], index: 1, kind: input, shape index: {}]   ;;  %s4165_s2 = inlined_call_operand.hbm [shape: f32[2,8,8,8], index: 2, kind: output, shape index: {}]  }
   0x1   :  { %9 = vsyncpa [#allocation3 + $0x1], 0 }
   0x2   :  { %10 = vsyncpa [#allocation4], 0 }
   0x3   :  { %12 = vsyncpa [#allocation4 + $0x1], 0  ;;  %s2869_s9 = smov 0   ;;  %s2871_s10 = smov 0  }
   0x4   :  { %s2873_s11 = smov 0   ;;  %s2875_s12 = smov 0  }
   0x5   :  { %s2877_s13 = smov 0   ;;  %s2879_s14 = smov 0  }
   0x6 LB: > { %s2590_s15 = sadd.s32 4294967295, %s2821_s14   ;;  %s2591_s16 = sadd.s32 4294967294, %s2821_s14   ;;  %s2821_s14 = sphi %s2879_s14, %s18_s14   ;;  %s2817_s13 = sphi %s2877_s13, %s4384_s13   ;;  %s2813_s12 = sphi %s2875_s12, %s4383_s12   ;;  %s2809_s11 = sphi %s2873_s11, %s4382_s11   ;;  %s2805_s10 = sphi %s2871_s10, %s4381_s10   ;;  %s2801_s9 = sphi %s2869_s9, %s4380_s9  }
   0x7   : > { %s30_s17 = sadd.s32 1, %s2817_s13  ;;  %s39_s18 = sadd.s32 1, %s2809_s11 }
   0x8   : > { %p32_p0 = scmp.ge.s32.totalorder %s30_s17, 2  ;;  %p46_p1 = scmp.ne.s32.totalorder %s2809_s11, %s2805_s10 }
   0x9   : > { %p47_p2 = scmp.eq.s32.totalorder %s2821_s14, 0  ;;  %p52_p3 = scmp.ne.s32.totalorder %s2805_s10, %s2801_s9 }
   0xa   : > { %s4386_s17 = smov (%p32_p0, %s30_s17), 0  ;;  %p53_p5 = scmp.eq.s32.totalorder %s2590_s15, 0 }
   0xb   : > { %p2910_p4 = por %p47_p2, %p46_p1  ;;  %s34_s20 = ssub.s32 %s2817_s13, %s4386_s17 }
   0xc   : > { %p99_p6 = scmp.eq.s32.totalorder %s2590_s15, 1  ;;  %p37_p7 = scmp.eq.s32.totalorder %s34_s20, 0 }
   0xd   : > { %p2916_p8 = por %p53_p5, %p52_p3  ;;  %p105_p10 = scmp.eq.s32.totalorder %s2591_s16, 1 }
   0xe   : > { %p2920_p9 = por %p99_p6, %p46_p1  ;;  %p2628_p13 = scmp.lt.s32.totalorder %s2821_s14, 2 }
   0xf   : > { %s2925_s23 = scalar_select %p37_p7, %s2809_s11, %s39_s18  }
  0x10   : > { %s4235_s22 = scalar_select %p2920_p9, 1, 0 }
  0x11   : > { %p2927_p11 = por %p105_p10, %p52_p3  ;;  %s128_s25 = sand.u32 1, %s2809_s11  }
  0x12   : > { %s2594_s26 = sshll.u32 %s128_s25, 6  ;;  %s2607_s27 = sshll.u32 %s2817_s13, 10 }
  0x13   : > { %s4236_s24 = scalar_select %p2927_p11, 1, 0 }
  0x14   : > { %s2938_s30 = scalar_lea.hbm %s4163_s0, %s2607_s27  ;;  %s132_s3 = scalar_lea.vmem [#allocation2], %s2594_s26 }
  0x15   : > { %s141_s4 = sshll.u32 %s132_s3, 4  ;;  %p2944_p0 = pnand %p2628_p13, %p2910_p4  ;;  %s2940_s4 = int_to_ptr.vmem [resolvable:$true] %s141_s4 }
  0x16   : > { %s2949_s6 = scalar_lea.sflag [#allocation3], %s128_s25  ;;  %s2709_s7 = scalar_lea.hbm %s2938_s30, 1024 }
  0x17   : > { %p2710_p2 = scmp.ne.s32.totalorder %s2938_s30, %s2709_s7  ;;  %p2711_p3 = pneg %p2944_p0 }
  0x18   : > { %s2714_s16 = scalar_lea.hbm %s4163_s0, 2048  ;;  %p2715_p4 = scmp.lt.u32.totalorder %s2938_s30, %s4163_s0 }
  0x19   : > { %p2712_p5 = pnand %p2711_p3, %p2710_p2  ;;  %p2716_p7 = scmp.lt.u32.totalorder %s2714_s16, %s2709_s7 }
  0x1a   : > { %p2718_p13 = scmp.lt.u32.totalorder %s2709_s7, %s2938_s30 }
  0x1b   : > { %p2713_p6 = pneg %p2712_p5  ;;  %p2717_p10 = por %p2716_p7, %p2715_p4 }
  0x1d   : > { %p2719_p12 = por %p2718_p13, %p2717_p10 }
  0x1f   : > { %p2720_p1 = pnand %p2719_p12, %p2713_p6 }
  0x21   : > { %2723 = shalt.err (!%p2720_p1)
}
  0x22   : > { %s2724_s20 = scalar_lea.vmem %s2940_s4, 1024  ;;  %s2823_s25 = smov [#allocation2]  }
  0x23   : > { %p2725_p2 = scmp.ne.s32.totalorder %s2940_s4, %s2724_s20  ;;  %s2729_s26 = sshll.u32 %s2823_s25, 4  ;;  %s2730_s26 = int_to_ptr.vmem [resolvable:$false] %s2729_s26 }
  0x24   : > { %s2731_s27 = scalar_lea.vmem %s2730_s26, 2048  ;;  %p2732_p9 = scmp.lt.s32.totalorder %s2940_s4, %s2730_s26 }
  0x25   : > { %p2727_p5 = pnand %p2725_p2, %p2711_p3  ;;  %p2733_p4 = scmp.lt.s32.totalorder %s2731_s27, %s2724_s20 }
  0x27   : > { %p2728_p11 = pneg %p2727_p5  ;;  %p2734_p7 = por %p2733_p4, %p2732_p9 }
  0x29   : > { %p2735_p10 = pnand %p2734_p7, %p2728_p11 }
  0x2b   : > { %2738 = shalt.err (!%p2735_p10)
}
  0x2c   : > { %s2824_s28 = smov 128   ;;  %s2825_s29 = smov 8  }
  0x2d   : > { %2623 = dma.hbm_to_vmem [thread:$0]  (!%p2944_p0), %s2938_s30, 1024, %s2940_s4, %s2949_s6, %s2824_s28, %s2824_s28, %s2825_s29  }
  0x2e   : > { %p149_p12 = scmp.lt.s32.totalorder %s2821_s14, 3  ;;  %p4238_p1 = scmp.ge.s32.totalorder %s2821_s14, 1 }
  0x30   : > { %p150_p3 = pnand %p4238_p1, %p149_p12 }
  0x32   : > { %153 = sbr.rel (%p150_p3) target bundleno = 1140 (0x474), region = 28 }
  0x39   : > { %s2981_s3 = sand.u32 1, %s2805_s10  }
  0x3a   : > { %s2598_s7 = sshll.u32 %s2981_s3, 6  ;;  %s156_s8 = scalar_lea.sflag [#allocation3], %s2981_s3 }
  0x3b   : > { %s2987_s15 = scalar_lea.vmem [#allocation2], %s2598_s7 }
  0x3c   : > { %2792 = dma.done.wait (%p2916_p8), %s156_s8, 1024  }
  0x3d   : > { %2794 = vsyncadd (%p2916_p8), %s156_s8, 4294966272  ;;  %v2994_v0 = vld [vmem:[%s2987_s15 + $0x20] sm:$0xff]  ;;  %s2826_s30 = smov 126   ;;  %v3004_v2 = vld [vmem:[%s2987_s15 + $0x30] sm:$0xff]  ;;  %s2827_s21 = smov 124   ;;  %v4167_v24 = vlaneseq  ;;  %vm2096_vm0 = vcmask 1041409  }
  0x3e   : > { %v2997_v1 = vld [vmem:[%s2987_s15] sm:$0xff]  ;;  %205 = vrot.lane.b32.xlu1 %v2994_v0, %s2826_s30  ;;  %v3007_v3 = vld [vmem:[%s2987_s15 + $0x10] sm:$0xff]  ;;  %s2828_s4 = smov 122   ;;  %s2829_s5 = smov 120   ;;  %v3062_v4 = vld [vmem:[%s2987_s15 + $0x18] sm:$0xff]  ;;  %vm2098_vm1 = vcmask 1042434  }
  0x3f   : > { %197 = vrot.lane.b32.xlu0 %v2997_v1, %s2826_s30  ;;  %s2830_s6 = smov 118   ;;  %s2831_s16 = smov 116   ;;  %v3065_v5 = vld [vmem:[%s2987_s15 + $0x8] sm:$0xff]  ;;  %v3072_v6 = vld [vmem:[%s2987_s15 + $0x38] sm:$0xff]  ;;  %v2833_v22 = vmov 1983009808  }
  0x40   : > { %s2832_s18 = smov 114   ;;  %4239 = vst [vmem:[#allocation8_spill] sm:$0xff] %v3072_v6  ;;  %v3075_v7 = vld [vmem:[%s2987_s15 + $0x28] sm:$0xff]  ;;  %v368_v23 = vunpack.c.l.s4 %v2833_v22  ;;  %v3144_v28 = vshrl.u32 %v4167_v24, 7  ;;  %v2834_v31 = vmov 1934713408  }
  0x41   : > { %4240 = vst [vmem:[#allocation9_spill] sm:$0xff] %v3075_v7  ;;  %v432_v32 = vunpack.c.l.s4 %v2834_v31  ;;  %s2835_s19 = smov 127   ;;  %vm2100_vm2 = vcmask 1043459   ;;  %vm2102_vm3 = vcmask 1044484   ;;  %vm2104_vm4 = vcmask 1045509   ;;  %s2838_s20 = smov 16  }
  0x42   : > { %209 = vrot.lane.b32.xlu1 %v3004_v2, %s2826_s30  ;;  %v369_v27 = vunpack.c.0.s8 %v368_v23  ;;  %4241 = vst [vmem:[#allocation10_spill] sm:$0xff] %v3144_v28  ;;  %vm2106_vm5 = vcmask 1046534   ;;  %vm2108_vm6 = vcmask 1047559   ;;  %s2839_s25 = smov 8   ;;  %vm2840_vm7 = vmmov 0   ;;  %s2841_s26 = smov 32  }
  0x43   : > { %201 = vrot.lane.b32.xlu0 %v3007_v3, %s2826_s30  ;;  %v433_v39 = vunpack.c.0.s8 %v432_v32  ;;  %s2842_s27 = smov 24   ;;  %s2843_s28 = smov 48   ;;  %vm2231_vm8 = vcmask 64512   ;;  %vm2233_vm9 = vcmask 130048   ;;  %vm2235_vm10 = vcmask 195584  }
  0x44   : > { %v3151_v35 = vsub.s32 %v369_v27, %v3144_v28  ;;  %s2844_s29 = smov 40   ;;  %s2845_s8 = smov 56   ;;  %vm2237_vm11 = vcmask 261120   ;;  %vm2239_vm12 = vcmask 326656   ;;  %vm2241_vm13 = vcmask 392192  }
  0x45   : > { %v3171_v52 = vsub.s32 %v433_v39, %v3144_v28  ;;  %vm2243_vm14 = vcmask 457728   ;;  %vm2249_vm15 = vcmask 1043456   ;;  %p4377_p9 = scmp.ne.s32.totalorder %s4235_s22, 0 }
  0x46   : > { %225 = vrot.lane.b32.xlu1 %v3007_v3, %s2827_s21  ;;  %4242 = vst [vmem:[#allocation11_spill] sm:$0xff] %v3151_v35 }
  0x47   : > { %221 = vrot.lane.b32.xlu0 %v2997_v1, %s2827_s21  ;;  %4243 = vst [vmem:[#allocation12_spill] sm:$0xff] %v3171_v52 }
  0x4a   : > { %233 = vrot.lane.b32.xlu1 %v3004_v2, %s2827_s21 }
  0x4b   : > { %229 = vrot.lane.b32.xlu0 %v2994_v0, %s2827_s21 }
  0x4e   : > { %249 = vrot.lane.b32.xlu1 %v3007_v3, %s2828_s4 }
  0x4f   : > { %245 = vrot.lane.b32.xlu0 %v2997_v1, %s2828_s4 }
  0x52   : > { %257 = vrot.lane.b32.xlu1 %v3004_v2, %s2828_s4 }
  0x53   : > { %253 = vrot.lane.b32.xlu0 %v2994_v0, %s2828_s4 }
  0x56   : > { %273 = vrot.lane.b32.xlu1 %v3007_v3, %s2829_s5 }
  0x57   : > { %269 = vrot.lane.b32.xlu0 %v2997_v1, %s2829_s5 }
  0x5a   : > { %281 = vrot.lane.b32.xlu1 %v3004_v2, %s2829_s5 }
  0x5b   : > { %277 = vrot.lane.b32.xlu0 %v2994_v0, %s2829_s5 }
  0x5e   : > { %297 = vrot.lane.b32.xlu1 %v3007_v3, %s2830_s6 }
  0x5f   : > { %293 = vrot.lane.b32.xlu0 %v2997_v1, %s2830_s6 }
  0x62   : > { %305 = vrot.lane.b32.xlu1 %v3004_v2, %s2830_s6 }
  0x63   : > { %301 = vrot.lane.b32.xlu0 %v2994_v0, %s2830_s6 }
  0x66   : > { %321 = vrot.lane.b32.xlu1 %v3007_v3, %s2831_s16 }
  0x67   : > { %317 = vrot.lane.b32.xlu0 %v2997_v1, %s2831_s16 }
  0x6a   : > { %329 = vrot.lane.b32.xlu1 %v3004_v2, %s2831_s16 }
  0x6b   : > { %325 = vrot.lane.b32.xlu0 %v2994_v0, %s2831_s16 }
  0x6e   : > { %345 = vrot.lane.b32.xlu1 %v3007_v3, %s2832_s18 }
  0x6f   : > { %341 = vrot.lane.b32.xlu0 %v2997_v1, %s2832_s18 }
  0x72   : > { %353 = vrot.lane.b32.xlu1 %v3004_v2, %s2832_s18 }
  0x73   : > { %349 = vrot.lane.b32.xlu0 %v2994_v0, %s2832_s18 }
  0x76   : > { %203 = vrot.lane.b32.xlu1 %v3062_v4, %s2826_s30 }
  0x77   : > { %199 = vrot.lane.b32.xlu0 %v3065_v5, %s2826_s30 }
  0x7a   : > { %211 = vrot.lane.b32.xlu1 %v3072_v6, %s2826_s30 }
  0x7b   : > { %207 = vrot.lane.b32.xlu0 %v3075_v7, %s2826_s30 }
  0x7e   : > { %227 = vrot.lane.b32.xlu1 %v3062_v4, %s2827_s21 }
  0x7f   : > { %223 = vrot.lane.b32.xlu0 %v3065_v5, %s2827_s21 }
  0x82   : > { %235 = vrot.lane.b32.xlu1 %v3072_v6, %s2827_s21 }
  0x83   : > { %231 = vrot.lane.b32.xlu0 %v3075_v7, %s2827_s21  ;;  %s2846_s21 = smov 112  }
  0x86   : > { %251 = vrot.lane.b32.xlu1 %v3062_v4, %s2828_s4 }
  0x87   : > { %247 = vrot.lane.b32.xlu0 %v3065_v5, %s2828_s4 }
  0x8a   : > { %259 = vrot.lane.b32.xlu1 %v3072_v6, %s2828_s4 }
  0x8b   : > { %255 = vrot.lane.b32.xlu0 %v3075_v7, %s2828_s4  ;;  %s2847_s4 = smov 96  }
  0x8e   : > { %275 = vrot.lane.b32.xlu1 %v3062_v4, %s2829_s5 }
  0x8f   : > { %271 = vrot.lane.b32.xlu0 %v3065_v5, %s2829_s5 }
  0x92   : > { %283 = vrot.lane.b32.xlu1 %v3072_v6, %s2829_s5 }
  0x93   : > { %279 = vrot.lane.b32.xlu0 %v3075_v7, %s2829_s5 }
  0x96   : > { %299 = vrot.lane.b32.xlu1 %v3062_v4, %s2830_s6 }
  0x97   : > { %295 = vrot.lane.b32.xlu0 %v3065_v5, %s2830_s6 }
  0x9a   : > { %307 = vrot.lane.b32.xlu1 %v3072_v6, %s2830_s6 }
  0x9b   : > { %303 = vrot.lane.b32.xlu0 %v3075_v7, %s2830_s6  ;;  %s2848_s6 = smov 104  }
  0x9e   : > { %323 = vrot.lane.b32.xlu1 %v3062_v4, %s2831_s16 }
  0x9f   : > { %319 = vrot.lane.b32.xlu0 %v3065_v5, %s2831_s16 }
  0xa2   : > { %331 = vrot.lane.b32.xlu1 %v3072_v6, %s2831_s16 }
  0xa3   : > { %327 = vrot.lane.b32.xlu0 %v3075_v7, %s2831_s16  ;;  %s2849_s16 = smov 80  }
  0xa6   : > { %347 = vrot.lane.b32.xlu1 %v3062_v4, %s2832_s18 }
  0xa7   : > { %343 = vrot.lane.b32.xlu0 %v3065_v5, %s2832_s18 }
  0xaa   : > { %355 = vrot.lane.b32.xlu1 %v3072_v6, %s2832_s18 }
  0xab   : > { %351 = vrot.lane.b32.xlu0 %v3075_v7, %s2832_s18  ;;  %s2850_s18 = smov 88  }
  0xb0   : > { %v3129_v8 = vpop.permute.xlu1 %205 }
  0xb1   : > { %v198_v9 = vpop.permute.xlu0 %197 }
  0xb4   : > { %v3131_v10 = vpop.permute.xlu1 %209 }
  0xb5   : > { %v202_v11 = vpop.permute.xlu0 %201 }
  0xb8   : > { %v226_v12 = vpop.permute.xlu1 %225 }
  0xb9   : > { %v222_v13 = vpop.permute.xlu0 %221  ;;  %v637_v36 = vcombine.low %v3007_v3, %v226_v12  ;;  %v638_v42 = vcombine.high %v3007_v3, %v226_v12 }
  0xba   : > { %v365_v40 = vcombine.low %v2997_v1, %v222_v13  ;;  %v366_v43 = vcombine.high %v2997_v1, %v222_v13 }
  0xbb   : > { %v645_v47 = vrot.slane %v637_v36, %v3151_v35  ;;  %v652_v57 = vrot.slane %v638_v42, %v3151_v35 }
  0xbc   : > { %v234_v14 = vpop.permute.xlu1 %233  ;;  %v373_v53 = vrot.slane %v365_v40, %v3151_v35  ;;  %v3179_v58 = vrot.slane %v366_v43, %v3151_v35 }
  0xbd   : > { %v230_v15 = vpop.permute.xlu0 %229  ;;  %v1181_v48 = vcombine.low %v3004_v2, %v234_v14  ;;  %v1182_v49 = vcombine.high %v3004_v2, %v234_v14 }
  0xbe   : > { %v909_v54 = vcombine.low %v2994_v0, %v230_v15  ;;  %v910_v55 = vcombine.high %v2994_v0, %v230_v15 }
  0xbf   : > { %v3187_v2 = vrot.slane %v1181_v48, %v3151_v35  ;;  %v3190_v0 = vrot.slane %v1182_v49, %v3151_v35 }
  0xc0   : > { %v250_v16 = vpop.permute.xlu1 %249  ;;  %v3199_v13 = vrot.slane %v909_v54, %v3151_v35  ;;  %v3202_v14 = vrot.slane %v910_v55, %v3151_v35 }
  0xc1   : > { %v246_v17 = vpop.permute.xlu0 %245  ;;  %v653_v33 = vcombine.low %v202_v11, %v250_v16  ;;  %v654_v41 = vcombine.high %v202_v11, %v250_v16 }
  0xc2   : > { %v381_v34 = vcombine.low %v198_v9, %v246_v17  ;;  %v382_v44 = vcombine.high %v198_v9, %v246_v17 }
  0xc3   : > { %v661_v45 = vrot.slane %v653_v33, %v3151_v35  ;;  %v668_v56 = vrot.slane %v654_v41, %v3151_v35 }
  0xc4   : > { %v258_v18 = vpop.permute.xlu1 %257  ;;  %v389_v46 = vrot.slane %v381_v34, %v3151_v35  ;;  %v3182_v59 = vrot.slane %v382_v44, %v3151_v35 }
  0xc5   : > { %v3133_v19 = vpop.permute.xlu0 %253  ;;  %v1197_v60 = vcombine.low %v3131_v10, %v258_v18  ;;  %v702_v61 = vcombine.high %v645_v47, %v661_v45  ;;  %v1198_v1 = vcombine.high %v3131_v10, %v258_v18  ;;  %v701_v3 = vcombine.low %v645_v47, %v661_v45 }
  0xc6   : > { %v429_v62 = vcombine.low %v373_v53, %v389_v46  ;;  %v430_v63 = vcombine.high %v373_v53, %v389_v46  ;;  %v925_v9 = vcombine.low %v3129_v8, %v3133_v19  ;;  %v717_v10 = vcombine.low %v652_v57, %v668_v56 }
  0xc7   : > { %v926_v15 = vcombine.high %v3129_v8, %v3133_v19  ;;  %v718_v16 = vcombine.high %v652_v57, %v668_v56  ;;  %v445_v17 = vcombine.low %v3179_v58, %v3182_v59  ;;  %v3211_v22 = vrot.slane %v1197_v60, %v3151_v35 }
  0xc8   : > { %v3135_v20 = vpop.permute.xlu1 %273  ;;  %v3214_v23 = vrot.slane %v1198_v1, %v3151_v35  ;;  %v3217_v27 = vrot.slane %v430_v63, %v3171_v52  ;;  %v3220_v31 = vrot.slane %v429_v62, %v3171_v52  ;;  %v3223_v8 = vrot.slane %v702_v61, %v3171_v52 }
  0xc9   : > { %v3137_v21 = vpop.permute.xlu0 %269  ;;  %v3226_v19 = vrot.slane %v925_v9, %v3151_v35  ;;  %v3233_v39 = vrot.slane %v701_v3, %v3171_v52  ;;  %v3236_v40 = vrot.slane %v926_v15, %v3151_v35  ;;  %v3241_v43 = vrot.slane %v717_v10, %v3171_v52 }
  0xca   : > { %v1245_v44 = vcombine.low %v3187_v2, %v3211_v22  ;;  %v1246_v45 = vcombine.high %v3187_v2, %v3211_v22  ;;  %v3248_v46 = vrot.slane %v445_v17, %v3171_v52  ;;  %v3251_v47 = vrot.slane %v718_v16, %v3171_v52 }
  0xcb   : > { %v973_v55 = vcombine.low %v3199_v13, %v3226_v19  ;;  %v974_v56 = vcombine.high %v3199_v13, %v3226_v19  ;;  %v4253_v2 = vcombine.low %v3190_v0, %v3214_v23 }
  0xcc   : > { %v3139_v25 = vpop.permute.xlu1 %281  ;;  %v1253_v13 = vrot.slane %v1245_v44, %v3171_v52  ;;  %v4254_v44 = vcombine.low %v3202_v14, %v3236_v40 }
  0xcd   : > { %v3141_v26 = vpop.permute.xlu0 %277  ;;  %v1269_v22 = vrot.slane %v4253_v2, %v3171_v52 }
  0xd0   : > { %v3146_v29 = vpop.permute.xlu1 %297 }
  0xd1   : > { %v3148_v30 = vpop.permute.xlu0 %293 }
  0xd4   : > { %v3154_v37 = vpop.permute.xlu1 %305 }
  0xd5   : > { %v3156_v38 = vpop.permute.xlu0 %301 }
  0xd8   : > { %v3166_v50 = vpop.permute.xlu1 %321 }
  0xd9   : > { %v3168_v51 = vpop.permute.xlu0 %317  ;;  %v669_v32 = vcombine.low %v3135_v20, %v3166_v50  ;;  %v670_v3 = vcombine.high %v3135_v20, %v3166_v50 }
  0xda   : > { %v397_v33 = vcombine.low %v3137_v21, %v3168_v51  ;;  %v398_v9 = vcombine.high %v3137_v21, %v3168_v51 }
  0xdb   : > { %v677_v57 = vrot.slane %v669_v32, %v3151_v35 }
  0xdc   : > { %v3194_v11 = vpop.permute.xlu1 %329  ;;  %v405_v60 = vrot.slane %v397_v33, %v3151_v35 }
  0xdd   : > { %v3196_v12 = vpop.permute.xlu0 %325  ;;  %v1213_v32 = vcombine.low %v3139_v25, %v3194_v11 }
  0xde   : > { %v941_v10 = vcombine.low %v3141_v26, %v3196_v12 }
  0xe0   : > { %v346_v34 = vpop.permute.xlu1 %345 }
  0xe1   : > { %v342_v36 = vpop.permute.xlu0 %341  ;;  %v685_v41 = vcombine.low %v3146_v29, %v346_v34  ;;  %v686_v24 = vcombine.high %v3146_v29, %v346_v34 }
  0xe2   : > { %v413_v42 = vcombine.low %v3148_v30, %v342_v36  ;;  %v414_v20 = vcombine.high %v3148_v30, %v342_v36  ;;  %v949_v30 = vrot.slane %v941_v10, %v3151_v35 }
  0xe3   : > { %v693_v53 = vrot.slane %v685_v41, %v3151_v35  ;;  %v700_v10 = vrot.slane %v686_v24, %v3151_v35  ;;  %v684_v24 = vrot.slane %v670_v3, %v3151_v35 }
  0xe4   : > { %v421_v54 = vrot.slane %v413_v42, %v3151_v35  ;;  %v354_v61 = vpop.permute.xlu1 %353 }
  0xe5   : > { %v350_v62 = vpop.permute.xlu0 %349  ;;  %v734_v15 = vcombine.high %v677_v57, %v693_v53  ;;  %v733_v33 = vcombine.low %v677_v57, %v693_v53  ;;  %v1229_v41 = vcombine.low %v3154_v37, %v354_v61  ;;  %v1230_v53 = vcombine.high %v3154_v37, %v354_v61 }
  0xe6   : > { %v461_v16 = vcombine.low %v405_v60, %v421_v54  ;;  %v462_v17 = vcombine.high %v405_v60, %v421_v54  ;;  %v957_v42 = vcombine.low %v3156_v38, %v350_v62  ;;  %v958_v60 = vcombine.high %v3156_v38, %v350_v62 }
  0xe7   : > { %v1237_v57 = vrot.slane %v1229_v41, %v3151_v35  ;;  %v1214_v37 = vcombine.high %v3139_v25, %v3194_v11  ;;  %v1221_v61 = vrot.slane %v1213_v32, %v3151_v35  ;;  %v942_v38 = vcombine.high %v3141_v26, %v3196_v12 }
  0xe8   : > { %v3281_v50 = vpop.permute.xlu1 %203  ;;  %v3286_v51 = vrot.slane %v462_v17, %v3171_v52  ;;  %v3289_v54 = vrot.slane %v461_v16, %v3171_v52  ;;  %v965_v29 = vrot.slane %v957_v42, %v3151_v35  ;;  %v748_v16 = vrot.slane %v734_v15, %v3171_v52 }
  0xe9   : > { %v3283_v21 = vpop.permute.xlu0 %199  ;;  %v741_v62 = vrot.slane %v733_v33, %v3171_v52  ;;  %v428_v17 = vrot.slane %v414_v20, %v3151_v35  ;;  %v1244_v11 = vrot.slane %v1230_v53, %v3151_v35  ;;  %v1277_v32 = vcombine.low %v1221_v61, %v1237_v57 }
  0xea   : > { %v3298_v34 = vcombine.low %v3217_v27, %v3286_v51  ;;  %v3302_v36 = vcombine.low %v3220_v31, %v3289_v54  ;;  %v1005_v41 = vcombine.low %v949_v30, %v965_v29  ;;  %v1006_v42 = vcombine.high %v949_v30, %v965_v29 }
  0xeb   : > { %v1278_v26 = vcombine.high %v1221_v61, %v1237_v57  ;;  %v972_v12 = vrot.slane %v958_v60, %v3151_v35  ;;  %v412_v33 = vrot.slane %v398_v9, %v3151_v35  ;;  %v3326_v20 = vcombine.low %v3223_v8, %v748_v16 }
  0xec   : > { %4244 = vst [vmem:[#allocation13_spill] sm:$0xff] %v3298_v34  ;;  %4245 = vst [vmem:[#allocation14_spill] sm:$0xff] %v3302_v36  ;;  %1487 = vrot.lane.b32.xlu1 %v3298_v34, %s2835_s19  ;;  %v3315_v15 = vpop.permute.xlu1 %211  ;;  %1485 = vrot.lane.b32.xlu0 %v3302_v36, %s2835_s19  ;;  %v1020_v29 = vrot.slane %v1006_v42, %v3171_v52  ;;  %v1228_v30 = vrot.slane %v1214_v37, %v3151_v35 }
  0xed   : > { %v3317_v25 = vpop.permute.xlu0 %207  ;;  %4247 = vst [vmem:[#allocation16_spill] sm:$0xff] %v3326_v20  ;;  %v956_v53 = vrot.slane %v942_v38, %v3151_v35  ;;  %v3332_v57 = vcombine.low %v3233_v39, %v741_v62  ;;  %v1013_v60 = vrot.slane %v1005_v41, %v3171_v52  ;;  %v749_v61 = vcombine.low %v684_v24, %v700_v10 }
  0xee   : > { %4246 = vst [vmem:[#allocation15_spill] sm:$0xff] %v3317_v25  ;;  %v477_v1 = vcombine.low %v412_v33, %v428_v17  ;;  %v988_v42 = vrot.slane %v974_v56, %v3171_v52  ;;  %v981_v37 = vrot.slane %v973_v55, %v3171_v52  ;;  %v1293_v38 = vcombine.low %v1228_v30, %v1244_v11 }
  0xef   : > { %4248 = vst [vmem:[#allocation17_spill] sm:$0xff] %v3332_v57  ;;  %v1021_v49 = vcombine.low %v956_v53, %v972_v12  ;;  %v1292_v41 = vrot.slane %v1278_v26, %v3171_v52  ;;  %v1285_v18 = vrot.slane %v1277_v32, %v3171_v52  ;;  %v750_v63 = vcombine.high %v684_v24, %v700_v10 }
  0xf0   : > { %1503 = vrot.lane.b32.xlu1 %v3326_v20, %s2835_s19  ;;  %v3337_v3 = vpop.permute.xlu1 %227  ;;  %1501 = vrot.lane.b32.xlu0 %v3332_v57, %s2835_s19  ;;  %v3350_v48 = vcombine.low %v988_v42, %v1020_v29  ;;  %v1260_v56 = vrot.slane %v1246_v45, %v3171_v52  ;;  %v478_v19 = vcombine.high %v412_v33, %v428_v17 }
  0xf1   : > { %v3339_v9 = vpop.permute.xlu0 %223  ;;  %v1294_v55 = vcombine.high %v1228_v30, %v1244_v11  ;;  %v1022_v28 = vcombine.high %v956_v53, %v972_v12  ;;  %v3360_v57 = vcombine.low %v981_v37, %v1013_v60  ;;  %v757_v26 = vrot.slane %v749_v61, %v3171_v52 }
  0xf2   : > { %4249 = vst [vmem:[#allocation18_spill] sm:$0xff] %v3350_v48  ;;  %v485_v45 = vrot.slane %v477_v1, %v3171_v52  ;;  %v997_v17 = vrot.slane %v4254_v44, %v3171_v52  ;;  %v3380_v11 = vcombine.low %v1260_v56, %v1292_v41  ;;  %v3382_v12 = vcombine.low %v1253_v13, %v1285_v18 }
  0xf3   : > { %4250 = vst [vmem:[#allocation19_spill] sm:$0xff] %v3360_v57  ;;  %v1301_v24 = vrot.slane %v1293_v38, %v3171_v52  ;;  %v1029_v1 = vrot.slane %v1021_v49, %v3171_v52  ;;  %v3388_v33 = vcombine.high %v3217_v27, %v3286_v51  ;;  %v3392_v30 = vcombine.high %v3220_v31, %v3289_v54 }
  0xf4   : > { %1519 = vrot.lane.b32.xlu1 %v3350_v48, %s2835_s19  ;;  %v3364_v10 = vpop.permute.xlu1 %235  ;;  %1517 = vrot.lane.b32.xlu0 %v3360_v57, %s2835_s19  ;;  %4255 = vst [vmem:[#allocation22_spill] sm:$0xff] %v3380_v11  ;;  %4256 = vst [vmem:[#allocation23_spill] sm:$0xff] %v3382_v12  ;;  %v3395_v53 = vcombine.high %v3223_v8, %v748_v16  ;;  %v3398_v61 = vcombine.high %v3233_v39, %v741_v62 }
  0xf5   : > { %4251 = vst [vmem:[#allocation20_spill] sm:$0xff] %v3364_v10  ;;  %v3366_v32 = vpop.permute.xlu0 %231  ;;  %v764_v2 = vrot.slane %v750_v63, %v3171_v52  ;;  %v492_v38 = vrot.slane %v478_v19, %v3171_v52  ;;  %v1308_v49 = vrot.slane %v1294_v55, %v3171_v52  ;;  %v1036_v44 = vrot.slane %v1022_v28, %v3171_v52 }
  0xf6   : > { %4252 = vst [vmem:[#allocation21_spill] sm:$0xff] %v3366_v32  ;;  %4257 = vst [vmem:[#allocation24_spill] sm:$0xff] %v3398_v61  ;;  %v3410_v8 = vcombine.high %v988_v42, %v1020_v29  ;;  %v3412_v51 = vcombine.high %v981_v37, %v1013_v60  ;;  %v3414_v39 = vcombine.high %v1260_v56, %v1292_v41 }
  0xf7   : > { %v3416_v63 = vcombine.high %v1253_v13, %v1285_v18  ;;  %v3421_v28 = vcombine.low %v3241_v43, %v757_v26  ;;  %v4263_v54 = vcombine.high %v3179_v58, %v3182_v59  ;;  %v4264_v62 = vcombine.high %v3190_v0, %v3214_v23 }
  0xf8   : > { %1535 = vrot.lane.b32.xlu1 %v3380_v11, %s2835_s19  ;;  %v3406_v27 = vpop.permute.xlu1 %251  ;;  %4258 = vst [vmem:[#allocation25_spill] sm:$0xff] %v3410_v8  ;;  %4259 = vst [vmem:[#allocation26_spill] sm:$0xff] %v3412_v51  ;;  %1533 = vrot.lane.b32.xlu0 %v3382_v12, %s2835_s19  ;;  %v4265_v18 = vcombine.high %v3202_v14, %v3236_v40  ;;  %v3436_v42 = vcombine.high %v3241_v43, %v757_v26 }
  0xf9   : > { %v3408_v31 = vpop.permute.xlu0 %247  ;;  %4260 = vst [vmem:[#allocation27_spill] sm:$0xff] %v3414_v39  ;;  %4261 = vst [vmem:[#allocation28_spill] sm:$0xff] %v3416_v63  ;;  %v460_v16 = vrot.slane %v4263_v54, %v3171_v52  ;;  %v1276_v29 = vrot.slane %v4264_v62, %v3171_v52  ;;  %v3439_v37 = vcombine.high %v3248_v46, %v485_v45 }
  0xfa   : > { %4262 = vst [vmem:[#allocation29_spill] sm:$0xff] %v3421_v28  ;;  %v1004_v60 = vrot.slane %v4265_v18, %v3171_v52  ;;  %4266 = vst [vmem:[#allocation30_spill] sm:$0xff] %v3436_v42  ;;  %v3441_v41 = vcombine.high %v1269_v22, %v1301_v24  ;;  %v3443_v58 = vcombine.high %v997_v17, %v1029_v1 }
  0xfb   : > { %4267 = vst [vmem:[#allocation31_spill] sm:$0xff] %v3439_v37  ;;  %v3446_v59 = vcombine.low %v3248_v46, %v485_v45  ;;  %v3455_v23 = vcombine.high %v3251_v47, %v764_v2  ;;  %v3457_v40 = vcombine.high %v460_v16, %v492_v38  ;;  %v3459_v43 = vcombine.high %v1276_v29, %v1308_v49 }
  0xfc   : > { %4268 = vst [vmem:[#allocation32_spill] sm:$0xff] %v3441_v41  ;;  %4269 = vst [vmem:[#allocation33_spill] sm:$0xff] %v3443_v58  ;;  %1505 = vrot.lane.b32.xlu1 %v3421_v28, %s2835_s19  ;;  %v3450_v0 = vpop.permute.xlu1 %259  ;;  %v3461_v56 = vcombine.high %v1004_v60, %v1036_v44  ;;  %v3465_v46 = vcombine.low %v1269_v22, %v1301_v24  ;;  %v3467_v13 = vcombine.low %v997_v17, %v1029_v1 }
  0xfd   : > { %4270 = vst [vmem:[#allocation34_spill] sm:$0xff] %v3446_v59  ;;  %v3452_v14 = vpop.permute.xlu0 %255  ;;  %4272 = vst [vmem:[#allocation36_spill] sm:$0xff] %v3455_v23  ;;  %1489 = vrot.lane.b32.xlu0 %v3446_v59, %s2835_s19  ;;  %v3478_v26 = vcombine.low %v3251_v47, %v764_v2  ;;  %v3480_v45 = vcombine.low %v460_v16, %v492_v38  ;;  %v3490_v24 = vcombine.low %v1276_v29, %v1308_v49 }
  0xfe   : > { %4271 = vst [vmem:[#allocation35_spill] sm:$0xff] %v3452_v14  ;;  %4273 = vst [vmem:[#allocation37_spill] sm:$0xff] %v3457_v40  ;;  %v3492_v1 = vcombine.low %v1004_v60, %v1036_v44  ;;  %v789_v44 = vcombine.low %v3281_v50, %v3406_v27  ;;  %v517_v62 = vcombine.low %v3283_v21, %v3408_v31 }
  0xff   : > { %4274 = vst [vmem:[#allocation38_spill] sm:$0xff] %v3459_v43  ;;  %4275 = vst [vmem:[#allocation39_spill] sm:$0xff] %v3461_v56  ;;  %v773_v60 = vcombine.low %v3062_v4, %v3337_v3  ;;  %v1333_v28 = vcombine.low %v3315_v15, %v3450_v0  ;;  %v1317_v57 = vcombine.low %v3072_v6, %v3364_v10 }
 0x100   : > { %4276 = vst [vmem:[#allocation40_spill] sm:$0xff] %v3465_v46  ;;  %4277 = vst [vmem:[#allocation41_spill] sm:$0xff] %v3467_v13  ;;  %1537 = vrot.lane.b32.xlu1 %v3465_v46, %s2835_s19  ;;  %v3471_v19 = vpop.permute.xlu1 %275  ;;  %v1061_v48 = vcombine.low %v3317_v25, %v3452_v14  ;;  %v1045_v20 = vcombine.low %v3075_v7, %v3366_v32 }
 0x101   : > { %v3473_v55 = vpop.permute.xlu0 %271  ;;  %1521 = vrot.lane.b32.xlu0 %v3467_v13, %s2835_s19  ;;  %4278 = vst [vmem:[#allocation42_spill] sm:$0xff] %v3478_v26  ;;  %4279 = vst [vmem:[#allocation43_spill] sm:$0xff] %v3480_v45  ;;  %v781_v11 = vrot.slane %v773_v60, %v3151_v35  ;;  %v1341_v58 = vrot.slane %v1333_v28, %v3151_v35  ;;  %v1325_v42 = vrot.slane %v1317_v57, %v3151_v35 }
 0x102   : > { %4281 = vst [vmem:[#allocation45_spill] sm:$0xff] %v3490_v24  ;;  %4282 = vst [vmem:[#allocation46_spill] sm:$0xff] %v3492_v1 }
 0x103   : > { %v1381_v7 = vcombine.low %v1325_v42, %v1341_v58 }
 0x104   : > { %1507 = vrot.lane.b32.xlu1 %v3478_v26, %s2835_s19  ;;  %v3484_v22 = vpop.permute.xlu1 %283  ;;  %v3528_v26 = vrot.slane %v517_v62, %v3151_v35 }
 0x105   : > { %v3486_v17 = vpop.permute.xlu0 %279  ;;  %1491 = vrot.lane.b32.xlu0 %v3480_v45, %s2835_s19  ;;  %v3525_v45 = vrot.slane %v789_v44, %v3151_v35 }
 0x106   : > { %4280 = vst [vmem:[#allocation44_spill] sm:$0xff] %v3486_v17 }
 0x107   : > { %v837_v43 = vcombine.low %v781_v11, %v3525_v45 }
 0x108   : > { %1539 = vrot.lane.b32.xlu1 %v3490_v24, %s2835_s19  ;;  %v3496_v47 = vpop.permute.xlu1 %299 }
 0x109   : > { %v3498_v2 = vpop.permute.xlu0 %295  ;;  %1523 = vrot.lane.b32.xlu0 %v3492_v1, %s2835_s19  ;;  %v501_v1 = vcombine.low %v3065_v5, %v3339_v9  ;;  %v845_v39 = vrot.slane %v837_v43, %v3171_v52  ;;  %v838_v43 = vcombine.high %v781_v11, %v3525_v45 }
 0x10b   : > { %v509_v62 = vrot.slane %v501_v1, %v3151_v35 }
 0x10c   : > { %v3502_v38 = vpop.permute.xlu1 %307 }
 0x10d   : > { %v3504_v54 = vpop.permute.xlu0 %303  ;;  %v565_v60 = vcombine.low %v509_v62, %v3528_v26 }
 0x110   : > { %v3506_v16 = vpop.permute.xlu1 %323 }
 0x111   : > { %v3508_v49 = vpop.permute.xlu0 %319  ;;  %v805_v24 = vcombine.low %v3471_v19, %v3506_v16 }
 0x112   : > { %v533_v13 = vcombine.low %v3473_v55, %v3508_v49 }
 0x113   : > { %v813_v36 = vrot.slane %v805_v24, %v3151_v35 }
 0x114   : > { %v3514_v29 = vpop.permute.xlu1 %331  ;;  %v541_v1 = vrot.slane %v533_v13, %v3151_v35  ;;  %v1053_v13 = vrot.slane %v1045_v20, %v3151_v35 }
 0x115   : > { %v3516_v18 = vpop.permute.xlu0 %327  ;;  %v1349_v41 = vcombine.low %v3484_v22, %v3514_v29 }
 0x116   : > { %4283 = vst [vmem:[#allocation47_spill] sm:$0xff] %v3516_v18 }
 0x117   : > { %v1357_v32 = vrot.slane %v1349_v41, %v3151_v35 }
 0x118   : > { %v3532_v46 = vpop.permute.xlu1 %347 }
 0x119   : > { %v3534_v59 = vpop.permute.xlu0 %343  ;;  %v821_v12 = vcombine.low %v3496_v47, %v3532_v46 }
 0x11a   : > { %v549_v44 = vcombine.low %v3498_v2, %v3534_v59 }
 0x11b   : > { %v829_v34 = vrot.slane %v821_v12, %v3151_v35  ;;  %v1069_v12 = vrot.slane %v1061_v48, %v3151_v35  ;;  %v573_v48 = vrot.slane %v565_v60, %v3171_v52 }
 0x11c   : > { %v557_v56 = vrot.slane %v549_v44, %v3151_v35  ;;  %v3556_v40 = vpop.permute.xlu1 %355  ;;  %v1077_v44 = vcombine.low %v3486_v17, %v3516_v18 }
 0x11d   : > { %v3558_v23 = vpop.permute.xlu0 %351  ;;  %v869_v24 = vcombine.low %v813_v36, %v829_v34  ;;  %v1365_v63 = vcombine.low %v3502_v38, %v3556_v40  ;;  %v1109_v6 = vcombine.low %v1053_v13, %v1069_v12 }
 0x11e   : > { %v597_v37 = vcombine.low %v541_v1, %v557_v56  ;;  %v1093_v28 = vcombine.low %v3504_v54, %v3558_v23  ;;  %v1085_v10 = vrot.slane %v1077_v44, %v3151_v35  ;;  %v598_v60 = vcombine.high %v541_v1, %v557_v56 }
 0x11f   : > { %v877_v51 = vrot.slane %v869_v24, %v3171_v52  ;;  %v1373_v57 = vrot.slane %v1365_v63, %v3151_v35  ;;  %v870_v24 = vcombine.high %v813_v36, %v829_v34  ;;  %v1382_v63 = vcombine.high %v1325_v42, %v1341_v58 }
 0x120   : > { %v605_v8 = vrot.slane %v597_v37, %v3171_v52  ;;  %v1101_v20 = vrot.slane %v1093_v28, %v3151_v35  ;;  %v566_v37 = vcombine.high %v509_v62, %v3528_v26  ;;  %v1110_v28 = vcombine.high %v1053_v13, %v1069_v12 }
 0x121   : > { %v3580_v61 = vcombine.low %v845_v39, %v877_v51  ;;  %v1413_v18 = vcombine.low %v1357_v32, %v1373_v57  ;;  %v1414_v25 = vcombine.high %v1357_v32, %v1373_v57  ;;  %v1389_v44 = vrot.slane %v1381_v7, %v3171_v52 }
 0x122   : > { %v3582_v17 = vcombine.low %v573_v48, %v605_v8  ;;  %v1141_v41 = vcombine.low %v1085_v10, %v1101_v20  ;;  %v1142_v14 = vcombine.high %v1085_v10, %v1101_v20  ;;  %v1117_v34 = vrot.slane %v1109_v6, %v3171_v52 }
 0x123   : > { %1509 = vrot.lane.b32.xlu1 %v3580_v61, %s2835_s19  ;;  %v1421_v11 = vrot.slane %v1413_v18, %v3171_v52  ;;  %v884_v10 = vrot.slane %v870_v24, %v3171_v52  ;;  %v612_v32 = vrot.slane %v598_v60, %v3171_v52  ;;  %v1428_v42 = vrot.slane %v1414_v25, %v3171_v52 }
 0x124   : > { %1493 = vrot.lane.b32.xlu0 %v3582_v17, %s2835_s19  ;;  %v1149_v36 = vrot.slane %v1141_v41, %v3171_v52  ;;  %v1156_v58 = vrot.slane %v1142_v14, %v3171_v52  ;;  %v852_v7 = vrot.slane %v838_v43, %v3171_v52  ;;  %v580_v6 = vrot.slane %v566_v37, %v3171_v52 }
 0x125   : > { %v3594_v56 = vcombine.low %v1389_v44, %v1421_v11  ;;  %v1396_v45 = vrot.slane %v1382_v63, %v3171_v52  ;;  %v1124_v18 = vrot.slane %v1110_v28, %v3171_v52  ;;  %v3610_v62 = vcombine.high %v845_v39, %v877_v51 }
 0x126   : > { %v3598_v26 = vcombine.low %v1117_v34, %v1149_v36  ;;  %v3612_v1 = vcombine.high %v573_v48, %v605_v8  ;;  %v3614_v25 = vcombine.high %v1389_v44, %v1421_v11  ;;  %v3616_v14 = vcombine.high %v1117_v34, %v1149_v36  ;;  %v4298_v34 = vld [vmem:[#allocation21_spill] sm:$0xff] }
 0x127   : > { %1541 = vrot.lane.b32.xlu1 %v3594_v56, %s2835_s19  ;;  %v3618_v12 = vcombine.low %v852_v7, %v884_v10  ;;  %v3620_v13 = vcombine.low %v580_v6, %v612_v32  ;;  %v3622_v57 = vcombine.high %v852_v7, %v884_v10  ;;  %v3624_v20 = vcombine.high %v580_v6, %v612_v32  ;;  %v4299_v36 = vld [vmem:[#allocation9_spill] sm:$0xff] }
 0x128   : > { %1525 = vrot.lane.b32.xlu0 %v3598_v26, %s2835_s19  ;;  %4284 = vst [vmem:[#allocation48_spill] sm:$0xff] %v3616_v14  ;;  %v3626_v43 = vcombine.high %v1396_v45, %v1428_v42  ;;  %v3628_v24 = vcombine.high %v1124_v18, %v1156_v58  ;;  %v3634_v8 = vcombine.low %v1396_v45, %v1428_v42  ;;  %v2836_v39 = vmov 0   ;;  %v4300_v45 = vld [vmem:[#allocation25_spill] sm:$0xff] }
 0x129   : > { %4285 = vst [vmem:[#allocation49_spill] sm:$0xff] %v3622_v57  ;;  %4286 = vst [vmem:[#allocation50_spill] sm:$0xff] %v3624_v20  ;;  %v3636_v51 = vcombine.low %v1124_v18, %v1156_v58  ;;  %2708 = vset.pattern.permute.xlu1 %v2836_v39  ;;  %2707 = vset.pattern.permute.xlu0 %v2836_v39  ;;  %v822_v48 = vcombine.high %v3496_v47, %v3532_v46 }
 0x12a   : > { %4287 = vst [vmem:[#allocation51_spill] sm:$0xff] %v3626_v43  ;;  %4288 = vst [vmem:[#allocation52_spill] sm:$0xff] %v3628_v24  ;;  %v550_v60 = vcombine.high %v3498_v2, %v3534_v59  ;;  %v790_v37 = vcombine.high %v3281_v50, %v3406_v27  ;;  %v806_v41 = vcombine.high %v3471_v19, %v3506_v16  ;;  %v4293_v2 = vld [vmem:[#allocation47_spill] sm:$0xff]  ;;  %v4296_v16 = vld [vmem:[#allocation20_spill] sm:$0xff] }
 0x12b   : > { %1511 = vrot.lane.b32.xlu1 %v3618_v12, %s2835_s19  ;;  %4289 = vst [vmem:[#allocation53_spill] sm:$0xff] %v3634_v8  ;;  %4290 = vst [vmem:[#allocation54_spill] sm:$0xff] %v3636_v51  ;;  %v518_v63 = vcombine.high %v3283_v21, %v3408_v31  ;;  %v534_v28 = vcombine.high %v3473_v55, %v3508_v49  ;;  %v774_v59 = vcombine.high %v3062_v4, %v3337_v3 }
 0x12c   : > { %1495 = vrot.lane.b32.xlu0 %v3620_v13, %s2835_s19  ;;  %v3661_v50 = vrot.slane %v822_v48, %v3151_v35  ;;  %v1366_v27 = vcombine.high %v3502_v38, %v3556_v40  ;;  %v502_v46 = vcombine.high %v3065_v5, %v3339_v9  ;;  %v564_v21 = vrot.slane %v550_v60, %v3151_v35  ;;  %v4291_v9 = vld [vmem:[#allocation35_spill] sm:$0xff]  ;;  %v4294_v38 = vld [vmem:[#allocation44_spill] sm:$0xff]  ;;  %v4301_v60 = vld [vmem:[#allocation26_spill] sm:$0xff] }
 0x12d   : > { %v1094_v31 = vcombine.high %v3504_v54, %v3558_v23  ;;  %v3671_v19 = vrot.slane %v790_v37, %v3151_v35  ;;  %v1334_v4 = vcombine.high %v3315_v15, %v3450_v0  ;;  %v820_v3 = vrot.slane %v806_v41, %v3151_v35  ;;  %v4292_v40 = vld [vmem:[#allocation15_spill] sm:$0xff]  ;;  %v4295_v15 = vld [vmem:[#allocation24_spill] sm:$0xff] }
 0x12e   : > { %v1350_v55 = vcombine.high %v3484_v22, %v3514_v29  ;;  %v532_v5 = vrot.slane %v518_v63, %v3151_v35  ;;  %v1062_v47 = vcombine.high %v4292_v40, %v4291_v9  ;;  %v548_v23 = vrot.slane %v534_v28, %v3151_v35  ;;  %v4297_v22 = vld [vmem:[#allocation8_spill] sm:$0xff] }
 0x12f   : > { %1543 = vrot.lane.b32.xlu1 %v3634_v8, %s2835_s19  ;;  %v1078_v54 = vcombine.high %v4294_v38, %v4293_v2  ;;  %v788_v0 = vrot.slane %v774_v59, %v3151_v35  ;;  %v1318_v49 = vcombine.high %v4297_v22, %v4296_v16  ;;  %v885_v29 = vcombine.low %v820_v3, %v3661_v50  ;;  %v4303_v9 = vld [vmem:[#allocation28_spill] sm:$0xff] }
 0x130   : > { %1527 = vrot.lane.b32.xlu0 %v3636_v51, %s2835_s19  ;;  %v1380_v44 = vrot.slane %v1366_v27, %v3151_v35  ;;  %v516_v11 = vrot.slane %v502_v46, %v3151_v35  ;;  %v1046_v10 = vcombine.high %v4299_v36, %v4298_v34  ;;  %v613_v32 = vcombine.low %v548_v23, %v564_v21 }
 0x131   : > { %v1108_v42 = vrot.slane %v1094_v31, %v3151_v35  ;;  %v853_v58 = vcombine.low %v788_v0, %v3671_v19  ;;  %v1348_v7 = vrot.slane %v1334_v4, %v3151_v35  ;;  %v1364_v6 = vrot.slane %v1350_v55, %v3151_v35  ;;  %v4302_v31 = vld [vmem:[#allocation27_spill] sm:$0xff] }
 0x132   : > { %v581_v18 = vcombine.low %v516_v11, %v532_v5  ;;  %v1076_v39 = vrot.slane %v1062_v47, %v3151_v35  ;;  %v1092_v48 = vrot.slane %v1078_v54, %v3151_v35  ;;  %v1332_v37 = vrot.slane %v1318_v49, %v3151_v35 }
 0x133   : > { %1679 = vrot.lane.b32.xlu1 %v3388_v33, %s2835_s19  ;;  %v1429_v41 = vcombine.low %v1364_v6, %v1380_v44  ;;  %v3708_v63 = vrot.slane %v885_v29, %v3171_v52  ;;  %v1060_v28 = vrot.slane %v1046_v10, %v3151_v35  ;;  %v3712_v27 = vrot.slane %v613_v32, %v3171_v52  ;;  %v4308_v32 = vld [vmem:[#allocation30_spill] sm:$0xff] }
 0x134   : > { %1677 = vrot.lane.b32.xlu0 %v3392_v30, %s2835_s19  ;;  %v1157_v59 = vcombine.low %v1092_v48, %v1108_v42  ;;  %v1397_v46 = vcombine.low %v1332_v37, %v1348_v7  ;;  %v861_v4 = vrot.slane %v853_v58, %v3171_v52  ;;  %v589_v40 = vrot.slane %v581_v18, %v3171_v52  ;;  %v4309_v18 = vld [vmem:[#allocation31_spill] sm:$0xff] }
 0x135   : > { %v1125_v55 = vcombine.low %v1060_v28, %v1076_v39  ;;  %v1437_v2 = vrot.slane %v1429_v41, %v3171_v52  ;;  %v886_v34 = vcombine.high %v820_v3, %v3661_v50  ;;  %v614_v36 = vcombine.high %v548_v23, %v564_v21 }
 0x136   : > { %v3721_v47 = vcombine.low %v861_v4, %v3708_v63  ;;  %v3725_v38 = vcombine.low %v589_v40, %v3712_v27  ;;  %v1165_v54 = vrot.slane %v1157_v59, %v3171_v52  ;;  %v1405_v16 = vrot.slane %v1397_v46, %v3171_v52 }
 0x137   : > { %1695 = vrot.lane.b32.xlu1 %v3395_v53, %s2835_s19  ;;  %v1133_v22 = vrot.slane %v1125_v55, %v3171_v52  ;;  %v854_v10 = vcombine.high %v788_v0, %v3671_v19  ;;  %v582_v58 = vcombine.high %v516_v11, %v532_v5  ;;  %v1430_v41 = vcombine.high %v1364_v6, %v1380_v44  ;;  %v4311_v19 = vld [vmem:[#allocation33_spill] sm:$0xff] }
 0x138   : > { %1693 = vrot.lane.b32.xlu0 %v4295_v15, %s2835_s19  ;;  %4304 = vst [vmem:[#allocation35_spill] sm:$0xff] %v3721_v47  ;;  %4305 = vst [vmem:[#allocation15_spill] sm:$0xff] %v3725_v38  ;;  %v3734_v49 = vcombine.low %v1405_v16, %v1437_v2  ;;  %v900_v59 = vrot.slane %v886_v34, %v3171_v52  ;;  %v1158_v46 = vcombine.high %v1092_v48, %v1108_v42  ;;  %v4318_v48 = vld [vmem:[#allocation38_spill] sm:$0xff] }
 0x139   : > { %v3736_v29 = vcombine.low %v1133_v22, %v1165_v54  ;;  %v628_v55 = vrot.slane %v614_v36, %v3171_v52  ;;  %v1398_v35 = vcombine.high %v1332_v37, %v1348_v7  ;;  %v868_v50 = vrot.slane %v854_v10, %v3171_v52  ;;  %v4319_v37 = vld [vmem:[#allocation39_spill] sm:$0xff] }
 0x13a   : > { %4306 = vst [vmem:[#allocation47_spill] sm:$0xff] %v3734_v49  ;;  %v1126_v21 = vcombine.high %v1060_v28, %v1076_v39  ;;  %v596_v3 = vrot.slane %v582_v58, %v3171_v52  ;;  %v1444_v23 = vrot.slane %v1430_v41, %v3171_v52  ;;  %v1172_v44 = vrot.slane %v1158_v46, %v3171_v52  ;;  %v4316_v39 = vld [vmem:[#allocation36_spill] sm:$0xff] }
 0x13b   : > { %1711 = vrot.lane.b32.xlu1 %v4300_v45, %s2835_s19  ;;  %4307 = vst [vmem:[#allocation44_spill] sm:$0xff] %v3736_v29  ;;  %v3756_v5 = vcombine.low %v868_v50, %v900_v59  ;;  %v1412_v11 = vrot.slane %v1398_v35, %v3171_v52  ;;  %v4317_v35 = vld [vmem:[#allocation37_spill] sm:$0xff]  ;;  %v3801_v58 = vcombine.high %v861_v4, %v3708_v63 }
 0x13c   : > { %1709 = vrot.lane.b32.xlu0 %v4301_v60, %s2835_s19  ;;  %v3759_v0 = vcombine.low %v596_v3, %v628_v55  ;;  %v1140_v42 = vrot.slane %v1126_v21, %v3171_v52  ;;  %v3804_v46 = vcombine.high %v589_v40, %v3712_v27  ;;  %v3810_v52 = vcombine.high %v1405_v16, %v1437_v2 }
 0x13d   : > { %4312 = vst [vmem:[#allocation24_spill] sm:$0xff] %v3756_v5  ;;  %v3768_v7 = vcombine.low %v1412_v11, %v1444_v23  ;;  %4320 = vst [vmem:[#allocation9_spill] sm:$0xff] %v3801_v58  ;;  %v3818_v4 = vcombine.high %v868_v50, %v900_v59  ;;  %v3820_v40 = vcombine.high %v596_v3, %v628_v55 }
 0x13e   : > { %4313 = vst [vmem:[#allocation20_spill] sm:$0xff] %v3759_v0  ;;  %v3770_v6 = vcombine.low %v1140_v42, %v1172_v44  ;;  %4321 = vst [vmem:[#allocation25_spill] sm:$0xff] %v3804_v46  ;;  %v3826_v2 = vcombine.high %v1412_v11, %v1444_v23  ;;  %v3830_v16 = vcombine.high %v1140_v42, %v1172_v44 }
 0x13f   : > { %1727 = vrot.lane.b32.xlu1 %v4302_v31, %s2835_s19  ;;  %4314 = vst [vmem:[#allocation8_spill] sm:$0xff] %v3768_v7  ;;  %4322 = vst [vmem:[#allocation26_spill] sm:$0xff] %v3810_v52 }
 0x140   : > { %1725 = vrot.lane.b32.xlu0 %v4303_v9, %s2835_s19  ;;  %4315 = vst [vmem:[#allocation21_spill] sm:$0xff] %v3770_v6  ;;  %4324 = vst [vmem:[#allocation28_spill] sm:$0xff] %v3818_v4 }
 0x141   : > { %4325 = vst [vmem:[#allocation30_spill] sm:$0xff] %v3820_v40  ;;  %4326 = vst [vmem:[#allocation31_spill] sm:$0xff] %v3826_v2 }
 0x143   : > { %1513 = vrot.lane.b32.xlu1 %v3721_v47, %s2835_s19 }
 0x144   : > { %1497 = vrot.lane.b32.xlu0 %v3725_v38, %s2835_s19  ;;  %v4334_v38 = vld [vmem:[#allocation17_spill] sm:$0xff] }
 0x147   : > { %1545 = vrot.lane.b32.xlu1 %v3734_v49, %s2835_s19 }
 0x148   : > { %1529 = vrot.lane.b32.xlu0 %v3736_v29, %s2835_s19  ;;  %v4310_v29 = vld [vmem:[#allocation32_spill] sm:$0xff] }
 0x149   : > { %4327 = vst [vmem:[#allocation32_spill] sm:$0xff] %v3830_v16 }
 0x14b   : > { %1697 = vrot.lane.b32.xlu1 %v4308_v32, %s2835_s19 }
 0x14c   : > { %1681 = vrot.lane.b32.xlu0 %v4309_v18, %s2835_s19 }
 0x14f   : > { %1729 = vrot.lane.b32.xlu1 %v4310_v29, %s2835_s19 }
 0x150   : > { %1713 = vrot.lane.b32.xlu0 %v4311_v19, %s2835_s19 }
 0x153   : > { %1515 = vrot.lane.b32.xlu1 %v3756_v5, %s2835_s19 }
 0x154   : > { %1499 = vrot.lane.b32.xlu0 %v3759_v0, %s2835_s19  ;;  %v4330_v0 = vld [vmem:[#allocation14_spill] sm:$0xff] }
 0x157   : > { %1547 = vrot.lane.b32.xlu1 %v3768_v7, %s2835_s19  ;;  %v4329_v7 = vld [vmem:[#allocation13_spill] sm:$0xff] }
 0x158   : > { %1531 = vrot.lane.b32.xlu0 %v3770_v6, %s2835_s19  ;;  %v3812_v6 = vcombine.high %v1133_v22, %v1165_v54 }
 0x15a   : > { %4323 = vst [vmem:[#allocation27_spill] sm:$0xff] %v3812_v6 }
 0x15b   : > { %1699 = vrot.lane.b32.xlu1 %v4316_v39, %s2835_s19 }
 0x15c   : > { %1683 = vrot.lane.b32.xlu0 %v4317_v35, %s2835_s19 }
 0x15e   : > { %v1488_v28 = vpop.permute.xlu1 %1487  ;;  %v1486_v34 = vpop.permute.xlu0 %1485 }
 0x15f   : > { %1731 = vrot.lane.b32.xlu1 %v4318_v48, %s2835_s19 }
 0x160   : > { %1715 = vrot.lane.b32.xlu0 %v4319_v37, %s2835_s19 }
 0x162   : > { %v1504_v36 = vpop.permute.xlu1 %1503  ;;  %v1502_v10 = vpop.permute.xlu0 %1501 }
 0x163   : > { %1701 = vrot.lane.b32.xlu1 %v3610_v62, %s2835_s19 }
 0x164   : > { %1685 = vrot.lane.b32.xlu0 %v3612_v1, %s2835_s19 }
 0x166   : > { %v1520_v41 = vpop.permute.xlu1 %1519  ;;  %v1518_v21 = vpop.permute.xlu0 %1517 }
 0x167   : > { %1733 = vrot.lane.b32.xlu1 %v3614_v25, %s2835_s19 }
 0x168   : > { %1717 = vrot.lane.b32.xlu0 %v3616_v14, %s2835_s19  ;;  %v4335_v14 = vld [vmem:[#allocation18_spill] sm:$0xff] }
 0x16a   : > { %v1536_v63 = vpop.permute.xlu1 %1535  ;;  %v1534_v27 = vpop.permute.xlu0 %1533 }
 0x16b   : > { %1703 = vrot.lane.b32.xlu1 %v3622_v57, %s2835_s19 }
 0x16c   : > { %1687 = vrot.lane.b32.xlu0 %v3624_v20, %s2835_s19 }
 0x16e   : > { %v3828_v54 = vpop.permute.xlu1 %1505 }
 0x16f   : > { %1735 = vrot.lane.b32.xlu1 %v3626_v43, %s2835_s19  ;;  %v3832_v22 = vpop.permute.xlu0 %1489  ;;  %v1589_v43 = vadd.f32 %v1502_v10, %v4334_v38 }
 0x170   : > { %1719 = vrot.lane.b32.xlu0 %v3628_v24, %s2835_s19 }
 0x172   : > { %v3838_v59 = vpop.permute.xlu1 %1537 }
 0x173   : > { %1705 = vrot.lane.b32.xlu1 %v3801_v58, %s2835_s19  ;;  %v3840_v55 = vpop.permute.xlu0 %1521  ;;  %v4333_v58 = vld [vmem:[#allocation16_spill] sm:$0xff] }
 0x174   : > { %1689 = vrot.lane.b32.xlu0 %v3804_v46, %s2835_s19  ;;  %v1590_v49 = vadd.f32 %v1504_v36, %v4333_v58  ;;  %v1621_v36 = vadd.f32 %v1589_v43, %v4295_v15 }
 0x176   : > { %v3842_v50 = vpop.permute.xlu1 %1507 }
 0x177   : > { %1737 = vrot.lane.b32.xlu1 %v3810_v52, %s2835_s19  ;;  %v3844_v3 = vpop.permute.xlu0 %1491  ;;  %v1581_v52 = vadd.f32 %v1486_v34, %v4330_v0  ;;  %v1622_v0 = vadd.f32 %v1590_v49, %v3395_v53  ;;  %v4336_v34 = vld [vmem:[#allocation19_spill] sm:$0xff] }
 0x178   : > { %1721 = vrot.lane.b32.xlu0 %v3812_v6, %s2835_s19  ;;  %v1582_v6 = vadd.f32 %v1488_v28, %v4329_v7  ;;  %v1598_v7 = vadd.f32 %v1520_v41, %v4335_v14  ;;  %v4338_v14 = vld [vmem:[#allocation23_spill] sm:$0xff] }
 0x179   : > { %v1613_v20 = vadd.f32 %v1581_v52, %v3392_v30  ;;  %v4337_v52 = vld [vmem:[#allocation22_spill] sm:$0xff] }
 0x17a   : > { %v3846_v23 = vpop.permute.xlu1 %1539  ;;  %v1614_v24 = vadd.f32 %v1582_v6, %v3388_v33  ;;  %v1606_v30 = vadd.f32 %v1536_v63, %v4337_v52 }
 0x17b   : > { %1707 = vrot.lane.b32.xlu1 %v3818_v4, %s2835_s19  ;;  %v3848_v44 = vpop.permute.xlu0 %1523 }
 0x17c   : > { %1691 = vrot.lane.b32.xlu0 %v3820_v40, %s2835_s19  ;;  %v1638_v15 = vadd.f32 %v1606_v30, %v4302_v31 }
 0x17f   : > { %1739 = vrot.lane.b32.xlu1 %v3826_v2, %s2835_s19 }
 0x180   : > { %1723 = vrot.lane.b32.xlu0 %v3830_v16, %s2835_s19  ;;  %s2851_s19 = smov 72  }
 0x195   : > { %v3850_v11 = vpop.permute.xlu1 %1509 }
 0x196   : > { %v3852_v42 = vpop.permute.xlu0 %1493 }
 0x199   : > { %v3854_v2 = vpop.permute.xlu1 %1541 }
 0x19a   : > { %v3856_v40 = vpop.permute.xlu0 %1525 }
 0x19d   : > { %v3858_v16 = vpop.permute.xlu1 %1511 }
 0x19e   : > { %v3860_v4 = vpop.permute.xlu0 %1495 }
 0x19f   : > { %4328 = vst [vmem:[#allocation33_spill] sm:$0xff] %v3860_v4 }
 0x1a1   : > { %v3864_v5 = vpop.permute.xlu1 %1543 }
 0x1a2   : > { %4331 = vst [vmem:[#allocation36_spill] sm:$0xff] %v3864_v5  ;;  %v3866_v46 = vpop.permute.xlu0 %1527  ;;  %v1597_v5 = vadd.f32 %v1518_v21, %v4336_v34 }
 0x1a3   : > { %4332 = vst [vmem:[#allocation37_spill] sm:$0xff] %v3866_v46 }
 0x1a5   : > { %v1680_v47 = vpop.permute.xlu1 %1679 }
 0x1a6   : > { %v1774_v51 = vadd.f32 %v1680_v47, %v1614_v24  ;;  %v1678_v57 = vpop.permute.xlu0 %1677  ;;  %v1629_v47 = vadd.f32 %v1597_v5, %v4301_v60 }
 0x1a7   : > { %v1773_v8 = vadd.f32 %v1678_v57, %v1613_v20  ;;  %v1630_v57 = vadd.f32 %v1598_v7, %v4300_v45  ;;  %v1605_v20 = vadd.f32 %v1534_v27, %v4338_v14  ;;  %v4339_v7 = vld [vmem:[#allocation29_spill] sm:$0xff] }
 0x1a8   : > { %v1806_v28 = vmul.f32 0.25, %v1774_v51  ;;  %v1591_v31 = vadd.f32 %v3828_v54, %v4339_v7 }
 0x1a9   : > { %v1805_v46 = vmul.f32 0.25, %v1773_v8  ;;  %v1696_v4 = vpop.permute.xlu1 %1695 }
 0x1aa   : > { %v1782_v33 = vadd.f32 %v1696_v4, %v1622_v0  ;;  %v1694_v6 = vpop.permute.xlu0 %1693  ;;  %1874 = vperm.xlu1 %2708, %v1806_v28   ;;  %v4340_v28 = vld [vmem:[#allocation34_spill] sm:$0xff] }
 0x1ab   : > { %v1781_v38 = vadd.f32 %v1694_v6, %v1621_v36  ;;  %1871 = vperm.xlu0 %2707, %v1805_v46   ;;  %v1637_v46 = vadd.f32 %v1605_v20, %v4303_v9  ;;  %v1583_v0 = vadd.f32 %v3832_v22, %v4340_v28  ;;  %v4341_v36 = vld [vmem:[#allocation40_spill] sm:$0xff]  ;;  %v1623_v6 = vadd.f32 %v1591_v31, %v4308_v32 }
 0x1ac   : > { %v1814_v24 = vmul.f32 0.25, %v1782_v33  ;;  %v1607_v33 = vadd.f32 %v3838_v59, %v4341_v36 }
 0x1ad   : > { %v1813_v51 = vmul.f32 0.25, %v1781_v38  ;;  %v1712_v53 = vpop.permute.xlu1 %1711  ;;  %v4342_v38 = vld [vmem:[#allocation41_spill] sm:$0xff] }
 0x1ae   : > { %v1790_v8 = vadd.f32 %v1712_v53, %v1630_v57  ;;  %v1710_v49 = vpop.permute.xlu0 %1709  ;;  %v1599_v52 = vadd.f32 %v3840_v55, %v4342_v38  ;;  %v1639_v22 = vadd.f32 %v1607_v33, %v4310_v29 }
 0x1af   : > { %v1789_v10 = vadd.f32 %v1710_v49, %v1629_v47  ;;  %1898 = vperm.xlu0 %2707, %v1814_v24   ;;  %1895 = vperm.xlu1 %2708, %v1813_v51   ;;  %v1615_v24 = vadd.f32 %v1583_v0, %v4309_v18 }
 0x1b0   : > { %v1822_v43 = vmul.f32 0.25, %v1790_v8  ;;  %v1631_v47 = vadd.f32 %v1599_v52, %v4311_v19  ;;  %v1609_v52 = vadd.f32 %v3854_v2, %v3594_v56 }
 0x1b1   : > { %v1821_v58 = vmul.f32 0.25, %v1789_v10  ;;  %v1728_v41 = vpop.permute.xlu1 %1727 }
 0x1b2   : > { %v1798_v21 = vadd.f32 %v1728_v41, %v1638_v15  ;;  %v1726_v45 = vpop.permute.xlu0 %1725  ;;  %v4344_v15 = vld [vmem:[#allocation43_spill] sm:$0xff]  ;;  %v1641_v56 = vadd.f32 %v1609_v52, %v3614_v25  ;;  %v4353_v25 = vld [vmem:[#allocation37_spill] sm:$0xff]  ;;  %v4361_v52 = vld [vmem:[#allocation44_spill] sm:$0xff] }
 0x1b3   : > { %v1797_v63 = vadd.f32 %v1726_v45, %v1637_v46  ;;  %1922 = vperm.xlu0 %2707, %v1822_v43   ;;  %1919 = vperm.xlu1 %2708, %v1821_v58   ;;  %v4343_v43 = vld [vmem:[#allocation42_spill] sm:$0xff]  ;;  %v1584_v58 = vadd.f32 %v3844_v3, %v4344_v15  ;;  %v4345_v46 = vld [vmem:[#allocation45_spill] sm:$0xff]  ;;  %v1593_v3 = vadd.f32 %v3850_v11, %v3580_v61 }
 0x1b4   : > { %v1830_v27 = vmul.f32 0.25, %v1798_v21  ;;  %v1592_v29 = vadd.f32 %v3842_v50, %v4343_v43  ;;  %v1608_v21 = vadd.f32 %v3846_v23, %v4345_v46  ;;  %v1585_v23 = vadd.f32 %v3852_v42, %v3582_v17 }
 0x1b5   : > { %v1829_v4 = vmul.f32 0.25, %v1797_v63  ;;  %v3882_v60 = vpop.permute.xlu1 %1513  ;;  %v4346_v63 = vld [vmem:[#allocation46_spill] sm:$0xff]  ;;  %v1616_v7 = vadd.f32 %v1584_v58, %v4317_v35  ;;  %v1625_v61 = vadd.f32 %v1593_v3, %v3610_v62  ;;  %v4347_v62 = vld [vmem:[#allocation33_spill] sm:$0xff] }
 0x1b6   : > { %v3884_v5 = vpop.permute.xlu0 %1497  ;;  %v1624_v45 = vadd.f32 %v1592_v29, %v4316_v39  ;;  %v1640_v36 = vadd.f32 %v1608_v21, %v4318_v48  ;;  %v1601_v48 = vadd.f32 %v3856_v40, %v3598_v26  ;;  %v1617_v42 = vadd.f32 %v1585_v23, %v3612_v1  ;;  %v4348_v40 = vld [vmem:[#allocation48_spill] sm:$0xff]  ;;  %v4354_v29 = vld [vmem:[#allocation50_spill] sm:$0xff] }
 0x1b7   : > { %1946 = vperm.xlu0 %2707, %v1830_v27   ;;  %1943 = vperm.xlu1 %2708, %v1829_v4   ;;  %v1600_v27 = vadd.f32 %v3848_v44, %v4346_v63  ;;  %v1586_v2 = vadd.f32 %v4347_v62, %v3620_v13 }
 0x1b9   : > { %v3890_v9 = vpop.permute.xlu1 %1545  ;;  %v1618_v15 = vadd.f32 %v1586_v2, %v4354_v29  ;;  %v4371_v29 = vld [vmem:[#allocation31_spill] sm:$0xff] }
 0x1ba   : > { %v3892_v34 = vpop.permute.xlu0 %1529 }
 0x1bd   : > { %v1698_v30 = vpop.permute.xlu1 %1697 }
 0x1be   : > { %v1783_v57 = vadd.f32 %v1698_v30, %v1623_v6  ;;  %v1682_v54 = vpop.permute.xlu0 %1681  ;;  %v1632_v6 = vadd.f32 %v1600_v27, %v4319_v37 }
 0x1bf   : > { %v1775_v14 = vadd.f32 %v1682_v54, %v1615_v24  ;;  %v1594_v54 = vadd.f32 %v3858_v16, %v3618_v12  ;;  %v4351_v12 = vld [vmem:[#allocation49_spill] sm:$0xff] }
 0x1c0   : > { %v1815_v20 = vmul.f32 0.25, %v1783_v57 }
 0x1c1   : > { %v1807_v51 = vmul.f32 0.25, %v1775_v14  ;;  %v1730_v53 = vpop.permute.xlu1 %1729  ;;  %v1626_v16 = vadd.f32 %v1594_v54, %v4351_v12 }
 0x1c2   : > { %v1799_v8 = vadd.f32 %v1730_v53, %v1639_v22  ;;  %v1714_v59 = vpop.permute.xlu0 %1713  ;;  %1901 = vperm.xlu0 %2707, %v1815_v20   ;;  %v1633_v22 = vadd.f32 %v1601_v48, %v4348_v40  ;;  %v4362_v48 = vld [vmem:[#allocation25_spill] sm:$0xff] }
 0x1c3   : > { %v1791_v32 = vadd.f32 %v1714_v59, %v1631_v47  ;;  %1877 = vperm.xlu1 %2708, %v1807_v51   ;;  %v4349_v47 = vld [vmem:[#allocation53_spill] sm:$0xff] }
 0x1c4   : > { %v1831_v49 = vmul.f32 0.25, %v1799_v8  ;;  %v4350_v8 = vld [vmem:[#allocation36_spill] sm:$0xff] }
 0x1c5   : > { %v1823_v55 = vmul.f32 0.25, %v1791_v32  ;;  %v3902_v10 = vpop.permute.xlu1 %1515  ;;  %v1610_v59 = vadd.f32 %v4350_v8, %v4349_v47 }
 0x1c6   : > { %v3904_v18 = vpop.permute.xlu0 %1499  ;;  %1949 = vperm.xlu0 %2707, %v1831_v49   ;;  %v4352_v49 = vld [vmem:[#allocation54_spill] sm:$0xff] }
 0x1c7   : > { %1925 = vperm.xlu1 %2708, %v1823_v55   ;;  %v1602_v55 = vadd.f32 %v4353_v25, %v4352_v49 }
 0x1c9   : > { %v3910_v19 = vpop.permute.xlu1 %1547 }
 0x1ca   : > { %v3912_v41 = vpop.permute.xlu0 %1531 }
 0x1cd   : > { %v1700_v4 = vpop.permute.xlu1 %1699 }
 0x1ce   : > { %v1784_v31 = vadd.f32 %v1700_v4, %v1624_v45  ;;  %v1684_v50 = vpop.permute.xlu0 %1683  ;;  %v4355_v45 = vld [vmem:[#allocation35_spill] sm:$0xff] }
 0x1cf   : > { %v1776_v28 = vadd.f32 %v1684_v50, %v1616_v7  ;;  %v1595_v63 = vadd.f32 %v3882_v60, %v4355_v45  ;;  %v4356_v4 = vld [vmem:[#allocation51_spill] sm:$0xff]  ;;  %v4360_v60 = vld [vmem:[#allocation9_spill] sm:$0xff] }
 0x1d0   : > { %v1816_v0 = vmul.f32 0.25, %v1784_v31  ;;  %v1642_v7 = vadd.f32 %v1610_v59, %v4356_v4  ;;  %v4357_v31 = vld [vmem:[#allocation15_spill] sm:$0xff]  ;;  %v4369_v59 = vld [vmem:[#allocation21_spill] sm:$0xff] }
 0x1d1   : > { %v1808_v33 = vmul.f32 0.25, %v1776_v28  ;;  %v1732_v39 = vpop.permute.xlu1 %1731  ;;  %v1587_v50 = vadd.f32 %v3884_v5, %v4357_v31 }
 0x1d2   : > { %v1800_v44 = vadd.f32 %v1732_v39, %v1640_v36  ;;  %v1716_v38 = vpop.permute.xlu0 %1715  ;;  %1904 = vperm.xlu0 %2707, %v1816_v0   ;;  %v4358_v0 = vld [vmem:[#allocation52_spill] sm:$0xff] }
 0x1d3   : > { %v1792_v35 = vadd.f32 %v1716_v38, %v1632_v6  ;;  %1880 = vperm.xlu1 %2708, %v1808_v33   ;;  %v1634_v36 = vadd.f32 %v1602_v55, %v4358_v0  ;;  %v4359_v6 = vld [vmem:[#allocation47_spill] sm:$0xff] }
 0x1d4   : > { %v1832_v30 = vmul.f32 0.25, %v1800_v44  ;;  %v1611_v44 = vadd.f32 %v3890_v9, %v4359_v6  ;;  %v4364_v9 = vld [vmem:[#allocation26_spill] sm:$0xff] }
 0x1d5   : > { %v1824_v11 = vmul.f32 0.25, %v1792_v35  ;;  %v1702_v17 = vpop.permute.xlu1 %1701  ;;  %v1627_v35 = vadd.f32 %v1595_v63, %v4360_v60 }
 0x1d6   : > { %v1785_v24 = vadd.f32 %v1702_v17, %v1625_v61  ;;  %v1686_v37 = vpop.permute.xlu0 %1685  ;;  %1952 = vperm.xlu0 %2707, %v1832_v30   ;;  %v1603_v30 = vadd.f32 %v3892_v34, %v4361_v52 }
 0x1d7   : > { %v1777_v57 = vadd.f32 %v1686_v37, %v1617_v42  ;;  %1928 = vperm.xlu1 %2708, %v1824_v11   ;;  %v1619_v11 = vadd.f32 %v1587_v50, %v4362_v48  ;;  %v4363_v37 = vld [vmem:[#allocation24_spill] sm:$0xff] }
 0x1d8   : > { %v1817_v14 = vmul.f32 0.25, %v1785_v24 }
 0x1d9   : > { %v1809_v20 = vmul.f32 0.25, %v1777_v57  ;;  %v1734_v26 = vpop.permute.xlu1 %1733  ;;  %v1596_v57 = vadd.f32 %v3902_v10, %v4363_v37  ;;  %v4368_v10 = vld [vmem:[#allocation28_spill] sm:$0xff] }
 0x1da   : > { %v1801_v51 = vadd.f32 %v1734_v26, %v1641_v56  ;;  %v1718_v1 = vpop.permute.xlu0 %1717  ;;  %1907 = vperm.xlu0 %2707, %v1817_v14   ;;  %v1643_v14 = vadd.f32 %v1611_v44, %v4364_v9  ;;  %v4365_v56 = vld [vmem:[#allocation20_spill] sm:$0xff] }
 0x1db   : > { %v1793_v53 = vadd.f32 %v1718_v1, %v1633_v22  ;;  %1883 = vperm.xlu1 %2708, %v1809_v20   ;;  %v1588_v62 = vadd.f32 %v3904_v18, %v4365_v56  ;;  %v4366_v20 = vld [vmem:[#allocation27_spill] sm:$0xff]  ;;  %v4367_v1 = vld [vmem:[#allocation8_spill] sm:$0xff]  ;;  %v1628_v8 = vadd.f32 %v1596_v57, %v4368_v10  ;;  %v4374_v57 = vld [vmem:[#allocation10_spill] sm:$0xff] }
 0x1dc   : > { %v1833_v32 = vmul.f32 0.25, %v1801_v51  ;;  %v1635_v26 = vadd.f32 %v1603_v30, %v4366_v20 }
 0x1dd   : > { %v1825_v43 = vmul.f32 0.25, %v1793_v53  ;;  %v1704_v13 = vpop.permute.xlu1 %1703  ;;  %v1612_v53 = vadd.f32 %v3910_v19, %v4367_v1 }
 0x1de   : > { %v1786_v58 = vadd.f32 %v1704_v13, %v1626_v16  ;;  %v1688_v46 = vpop.permute.xlu0 %1687  ;;  %1955 = vperm.xlu0 %2707, %v1833_v32   ;;  %v1604_v32 = vadd.f32 %v3912_v41, %v4369_v59  ;;  %v4370_v16 = vld [vmem:[#allocation30_spill] sm:$0xff] }
 0x1df   : > { %v1778_v21 = vadd.f32 %v1688_v46, %v1618_v15  ;;  %1931 = vperm.xlu1 %2708, %v1825_v43   ;;  %v1620_v49 = vadd.f32 %v1588_v62, %v4370_v16  ;;  %v1644_v15 = vadd.f32 %v1612_v53, %v4371_v29  ;;  %v4372_v46 = vld [vmem:[#allocation32_spill] sm:$0xff] }
 0x1e0   : > { %v1818_v27 = vmul.f32 0.25, %v1786_v58 }
 0x1e1   : > { %v1810_v28 = vmul.f32 0.25, %v1778_v21  ;;  %v1736_v3 = vpop.permute.xlu1 %1735  ;;  %v1636_v21 = vadd.f32 %v1604_v32, %v4372_v46 }
 0x1e2   : > { %v1802_v23 = vadd.f32 %v1736_v3, %v1642_v7  ;;  %v1720_v33 = vpop.permute.xlu0 %1719  ;;  %1910 = vperm.xlu0 %2707, %v1818_v27   ;;  %v2837_v7 = vmov 0.0  }
 0x1e3   : > { %v1794_v39 = vadd.f32 %v1720_v33, %v1634_v36  ;;  %1886 = vperm.xlu1 %2708, %v1810_v28   ;;  %2611 = vmatprep.subr.mxu0 %v2837_v7 }
 0x1e4   : > { %v1834_v38 = vmul.f32 0.25, %v1802_v23  ;;  %2613 = vmatprep.mubr.msk.f32.mxu0 %vm2840_vm7, %v2837_v7 }
 0x1e5   : > { %v1826_v61 = vmul.f32 0.25, %v1794_v39  ;;  %v1706_v5 = vpop.permute.xlu1 %1705 }
 0x1e6   : > { %v1787_v17 = vadd.f32 %v1706_v5, %v1627_v35  ;;  %v1690_v42 = vpop.permute.xlu0 %1689  ;;  %1958 = vperm.xlu0 %2707, %v1834_v38  }
 0x1e7   : > { %v1779_v24 = vadd.f32 %v1690_v42, %v1619_v11  ;;  %1934 = vperm.xlu1 %2708, %v1826_v61  }
 0x1e8   : > { %v1819_v54 = vmul.f32 0.25, %v1787_v17  ;;  %v4373_v17 = vlaneseq }
 0x1e9   : > { %v1811_v2 = vmul.f32 0.25, %v1779_v24  ;;  %v1738_v34 = vpop.permute.xlu1 %1737 }
 0x1ea   : > { %v1803_v40 = vadd.f32 %v1738_v34, %v1643_v14  ;;  %v1722_v22 = vpop.permute.xlu0 %1721  ;;  %1913 = vperm.xlu0 %2707, %v1819_v54   ;;  %v1967_v42 = vand.u32 127, %v4373_v17 }
 0x1eb   : > { %v1795_v51 = vadd.f32 %v1722_v22, %v1635_v26  ;;  %1889 = vperm.xlu1 %2708, %v1811_v2  }
 0x1ec   : > { %v1835_v47 = vmul.f32 0.25, %v1803_v40  ;;  %v3985_v54 = vsub.s32 %v1967_v42, %v4374_v57 }
 0x1ed   : > { %v1827_v12 = vmul.f32 0.25, %v1795_v51  ;;  %v1708_v18 = vpop.permute.xlu1 %1707 }
 0x1ee   : > { %v1788_v25 = vadd.f32 %v1708_v18, %v1628_v8  ;;  %v1692_v55 = vpop.permute.xlu0 %1691  ;;  %1961 = vperm.xlu0 %2707, %v1835_v47  }
 0x1ef   : > { %v1780_v43 = vadd.f32 %v1692_v55, %v1620_v49  ;;  %1937 = vperm.xlu1 %2708, %v1827_v12  }
 0x1f0   : > { %v1820_v13 = vmul.f32 0.25, %v1788_v25 }
 0x1f1   : > { %v1812_v58 = vmul.f32 0.25, %v1780_v43  ;;  %v1740_v19 = vpop.permute.xlu1 %1739 }
 0x1f2   : > { %v1804_v45 = vadd.f32 %v1740_v19, %v1644_v15  ;;  %v1724_v63 = vpop.permute.xlu0 %1723  ;;  %1916 = vperm.xlu0 %2707, %v1820_v13  }
 0x1f3   : > { %v1796_v41 = vadd.f32 %v1724_v63, %v1636_v21  ;;  %1892 = vperm.xlu1 %2708, %v1812_v58  }
 0x1f4   : > { %v1836_v27 = vmul.f32 0.25, %v1804_v45 }
 0x1f5   : > { %v1828_v4 = vmul.f32 0.25, %v1796_v41 }
 0x1f6   : > { %1964 = vperm.xlu0 %2707, %v1836_v27  }
 0x1f7   : > { %1940 = vperm.xlu1 %2708, %v1828_v4  }
 0x229   : > { %v1875_v50 = vpop.permute.xlu1 %1874 }
 0x22a   : > { %v1872_v31 = vpop.permute.xlu0 %1871  ;;  %v1975_v56 = vrot.slane %v1875_v50, %v3985_v54 }
 0x22b   : > { %v1971_v62 = vrot.slane %v1872_v31, %v3985_v54 }
 0x22d   : > { %v2097_v18 = vsel %vm2096_vm0, %v1975_v56, %v1971_v62 }
 0x22e   : > { %v1899_v28 = vpop.permute.xlu0 %1898  ;;  %v1896_v3 = vpop.permute.xlu1 %1895 }
 0x22f   : > { %v2003_v34 = vrot.slane %v1896_v3, %v3985_v54  ;;  %v2007_v20 = vrot.slane %v1899_v28, %v3985_v54 }
 0x231   : > { %v2110_v16 = vsel %vm2096_vm0, %v2007_v20, %v2003_v34 }
 0x232   : > { %v1923_v0 = vpop.permute.xlu0 %1922  ;;  %v1920_v36 = vpop.permute.xlu1 %1919 }
 0x233   : > { %v2035_v26 = vrot.slane %v1920_v36, %v3985_v54  ;;  %v2039_v40 = vrot.slane %v1923_v0, %v3985_v54 }
 0x235   : > { %v2117_v49 = vsel %vm2096_vm0, %v2039_v40, %v2035_v26 }
 0x236   : > { %v1947_v23 = vpop.permute.xlu0 %1946  ;;  %v1944_v33 = vpop.permute.xlu1 %1943 }
 0x237   : > { %v2067_v51 = vrot.slane %v1944_v33, %v3985_v54  ;;  %v2071_v1 = vrot.slane %v1947_v23, %v3985_v54 }
 0x239   : > { %v2124_v43 = vsel %vm2096_vm0, %v2071_v1, %v2067_v51  ;;  %vm2245_vm0 = vcmask 31744  }
 0x241   : > { %v1902_v39 = vpop.permute.xlu0 %1901 }
 0x242   : > { %v1878_v6 = vpop.permute.xlu1 %1877  ;;  %v2011_v47 = vrot.slane %v1902_v39, %v3985_v54 }
 0x243   : > { %v1979_v53 = vrot.slane %v1878_v6, %v3985_v54 }
 0x244   : > { %v2111_v29 = vsel %vm2098_vm1, %v2011_v47, %v2110_v16 }
 0x245   : > { %v1950_v44 = vpop.permute.xlu0 %1949  ;;  %v2099_v13 = vsel %vm2098_vm1, %v1979_v53, %v2097_v18  ;;  %v4375_v53 = vld [vmem:[#allocation11_spill] sm:$0xff] }
 0x246   : > { %v1926_v38 = vpop.permute.xlu1 %1925  ;;  %v2075_v8 = vrot.slane %v1950_v44, %v3985_v54 }
 0x247   : > { %v2043_v10 = vrot.slane %v1926_v38, %v3985_v54 }
 0x248   : > { %v2125_v19 = vsel %vm2098_vm1, %v2075_v8, %v2124_v43 }
 0x249   : > { %v2118_v58 = vsel %vm2098_vm1, %v2043_v10, %v2117_v49 }
 0x251   : > { %v1905_v60 = vpop.permute.xlu0 %1904 }
 0x252   : > { %v1881_v35 = vpop.permute.xlu1 %1880  ;;  %v2015_v59 = vrot.slane %v1905_v60, %v3985_v54 }
 0x253   : > { %v1983_v32 = vrot.slane %v1881_v35, %v3985_v54 }
 0x254   : > { %v2112_v46 = vsel %vm2100_vm2, %v2015_v59, %v2111_v29 }
 0x255   : > { %v1953_v52 = vpop.permute.xlu0 %1952  ;;  %v2101_v45 = vsel %vm2100_vm2, %v1983_v32, %v2099_v13 }
 0x256   : > { %v1929_v30 = vpop.permute.xlu1 %1928  ;;  %v2079_v25 = vrot.slane %v1953_v52, %v3985_v54 }
 0x257   : > { %v2047_v15 = vrot.slane %v1929_v30, %v3985_v54 }
 0x258   : > { %v2126_v31 = vsel %vm2100_vm2, %v2079_v25, %v2125_v19 }
 0x259   : > { %v3971_v61 = vpop.permute.xlu0 %1907  ;;  %v2119_v36 = vsel %vm2100_vm2, %v2047_v15, %v2118_v58 }
 0x25a   : > { %v3973_v5 = vpop.permute.xlu1 %1883  ;;  %v2019_v21 = vrot.slane %v3971_v61, %v3985_v54 }
 0x25b   : > { %v1987_v63 = vrot.slane %v3973_v5, %v3985_v54 }
 0x25c   : > { %v2113_v6 = vsel %vm2102_vm3, %v2019_v21, %v2112_v46 }
 0x25d   : > { %v3975_v48 = vpop.permute.xlu0 %1955  ;;  %v2103_v35 = vsel %vm2102_vm3, %v1987_v63, %v2101_v45 }
 0x25e   : > { %v3977_v11 = vpop.permute.xlu1 %1931  ;;  %v2083_v27 = vrot.slane %v3975_v48, %v3985_v54 }
 0x25f   : > { %v2051_v41 = vrot.slane %v3977_v11, %v3985_v54 }
 0x260   : > { %v2127_v30 = vsel %vm2102_vm3, %v2083_v27, %v2126_v31 }
 0x261   : > { %v3980_v24 = vpop.permute.xlu0 %1910  ;;  %v2120_v52 = vsel %vm2102_vm3, %v2051_v41, %v2119_v36 }
 0x262   : > { %v3982_v37 = vpop.permute.xlu1 %1886  ;;  %v2023_v28 = vrot.slane %v3980_v24, %v3985_v54 }
 0x263   : > { %v1991_v50 = vrot.slane %v3982_v37, %v3985_v54 }
 0x264   : > { %v2114_v11 = vsel %vm2104_vm4, %v2023_v28, %v2113_v6 }
 0x265   : > { %v3987_v9 = vpop.permute.xlu0 %1958  ;;  %v2105_v48 = vsel %vm2104_vm4, %v1991_v50, %v2103_v35 }
 0x266   : > { %v3989_v14 = vpop.permute.xlu1 %1934  ;;  %v2087_v3 = vrot.slane %v3987_v9, %v3985_v54 }
 0x267   : > { %v2055_v23 = vrot.slane %v3989_v14, %v3985_v54 }
 0x268   : > { %v2128_v17 = vsel %vm2104_vm4, %v2087_v3, %v2127_v30 }
 0x269   : > { %v3993_v2 = vpop.permute.xlu0 %1913  ;;  %v2121_v37 = vsel %vm2104_vm4, %v2055_v23, %v2120_v52 }
 0x26a   : > { %v1890_v22 = vpop.permute.xlu1 %1889  ;;  %v2027_v33 = vrot.slane %v3993_v2, %v3985_v54 }
 0x26b   : > { %v1995_v44 = vrot.slane %v1890_v22, %v3985_v54 }
 0x26c   : > { %v2115_v57 = vsel %vm2106_vm5, %v2027_v33, %v2114_v11 }
 0x26d   : > { %v1962_v12 = vpop.permute.xlu0 %1961  ;;  %v2107_v56 = vsel %vm2106_vm5, %v1995_v44, %v2105_v48 }
 0x26e   : > { %v1938_v55 = vpop.permute.xlu1 %1937  ;;  %v2091_v39 = vrot.slane %v1962_v12, %v3985_v54  ;;  %v4376_v12 = vld [vmem:[#allocation12_spill] sm:$0xff] }
 0x26f   : > { %v2059_v38 = vrot.slane %v1938_v55, %v3985_v54 }
 0x270   : > { %v2129_v9 = vsel %vm2106_vm5, %v2091_v39, %v2128_v17 }
 0x271   : > { %v1917_v4 = vpop.permute.xlu0 %1916  ;;  %v2122_v62 = vsel %vm2106_vm5, %v2059_v38, %v2121_v37 }
 0x272   : > { %v1893_v0 = vpop.permute.xlu1 %1892  ;;  %v2031_v60 = vrot.slane %v1917_v4, %v3985_v54 }
 0x273   : > { %v1999_v61 = vrot.slane %v1893_v0, %v3985_v54  ;;  %v1837_v0 = vld [vmem:[%s4164_s1] sm:$0xff] }
 0x274   : > { %v2116_v2 = vsel %vm2108_vm6, %v2031_v60, %v2115_v57 }
 0x275   : > { %v1965_v5 = vpop.permute.xlu0 %1964  ;;  %v2109_v20 = vsel %vm2108_vm6, %v1999_v61, %v2107_v56 }
 0x276   : > { %v1941_v42 = vpop.permute.xlu1 %1940  ;;  %v2095_v24 = vrot.slane %v1965_v5, %v3985_v54 }
 0x277   : > { %v2063_v14 = vrot.slane %v1941_v42, %v3985_v54 }
 0x278   : > { %v2130_v34 = vsel %vm2108_vm6, %v2095_v24, %v2129_v9 }
 0x279   : > { %v2123_v26 = vsel %vm2108_vm6, %v2063_v14, %v2122_v62  ;;  %v2151_v40 = vcombine.low %v2116_v2, %v2130_v34  ;;  %v2152_v22 = vcombine.high %v2116_v2, %v2130_v34 }
 0x27a   : > { %v2135_v51 = vcombine.low %v2109_v20, %v2123_v26  ;;  %v2136_v1 = vcombine.high %v2109_v20, %v2123_v26 }
 0x27b   : > { %v2159_v47 = vrot.slane %v2151_v40, %v4375_v53  ;;  %v2166_v8 = vrot.slane %v2152_v22, %v4375_v53 }
 0x27c   : > { %v2143_v54 = vrot.slane %v2135_v51, %v4375_v53  ;;  %v2150_v10 = vrot.slane %v2136_v1, %v4375_v53 }
 0x27e   : > { %v2167_v59 = vcombine.low %v2143_v54, %v2159_v47  ;;  %v2168_v32 = vcombine.high %v2143_v54, %v2159_v47  ;;  %v2183_v49 = vcombine.low %v2150_v10, %v2166_v8  ;;  %v2184_v43 = vcombine.high %v2150_v10, %v2166_v8 }
 0x280   : > { %v2182_v18 = vrot.slane %v2168_v32, %v4376_v12  ;;  %v2175_v16 = vrot.slane %v2167_v59, %v4376_v12  ;;  %v2191_v55 = vrot.slane %v2183_v49, %v4376_v12  ;;  %v2198_v29 = vrot.slane %v2184_v43, %v4376_v12 }
 0x282   : > { %2208 = vrot.lane.b32.xlu0 %v2182_v18, %s2838_s20  ;;  %v2199_v25 = vcombine.high %v2175_v16, %v2837_v7  ;;  %v2200_v13 = vcombine.high %v2182_v18, %v2837_v7  ;;  %v2201_v15 = vcombine.high %v2191_v55, %v2837_v7  ;;  %v2202_v58 = vcombine.high %v2198_v29, %v2837_v7  ;;  %s179_s20 = scalar_lea.vmem [#allocation5], %s2598_s7  ;;  %s2490_s7 = scalar_lea.sflag [#allocation4], %s2981_s3 }
 0x284   : > { %2204 = vrot.lane.b32.xlu1 %v2199_v25, %s2839_s25 }
 0x286   : > { %2216 = vrot.lane.b32.xlu0 %v2191_v55, %s2841_s26  ;;  %s2504_s26 = sshll.u32 %s179_s20, 4  ;;  %s4105_s26 = int_to_ptr.vmem [resolvable:$true] %s2504_s26 }
 0x288   : > { %2212 = vrot.lane.b32.xlu1 %v2200_v13, %s2842_s27 }
 0x28a   : > { %2224 = vrot.lane.b32.xlu0 %v2198_v29, %s2843_s28 }
 0x28c   : > { %2220 = vrot.lane.b32.xlu1 %v2201_v15, %s2844_s29  ;;  %s2739_s29 = scalar_lea.vmem %s4105_s26, 1024 }
 0x28d   : > { %p2740_p8 = scmp.ne.s32.totalorder %s4105_s26, %s2739_s29 }
 0x28f   : > { %p2741_p11 = pnand %p2740_p8, %p4377_p9 }
 0x290   : > { %2228 = vrot.lane.b32.xlu1 %v2202_v58, %s2845_s8  ;;  %s2852_s8 = smov [#allocation5]  }
 0x291   : > { %p2742_p0 = pneg %p2741_p11  ;;  %s2743_s15 = sshll.u32 %s2852_s8, 4  ;;  %s2744_s15 = int_to_ptr.vmem [resolvable:$false] %s2743_s15 }
 0x292   : > { %s2745_s30 = scalar_lea.vmem %s2744_s15, 2048  ;;  %p2746_p6 = scmp.lt.s32.totalorder %s4105_s26, %s2744_s15 }
 0x293   : > { %p2747_p13 = scmp.lt.s32.totalorder %s2745_s30, %s2739_s29 }
 0x295   : > { %p2748_p2 = por %p2747_p13, %p2746_p6 }
 0x297   : > { %p2749_p5 = pnand %p2748_p2, %p2742_p0 }
 0x2f4   : > { %v2209_v19 = vpop.permute.xlu0 %2208 }
 0x2f6   : > { %v2205_v46 = vpop.permute.xlu1 %2204 }
 0x2f7   : > { %v2232_v21 = vsel %vm2231_vm8, %v2175_v16, %v2205_v46 }
 0x2f8   : > { %v2234_v45 = vsel %vm2233_vm9, %v2232_v21, %v2209_v19  ;;  %v2217_v41 = vpop.permute.xlu0 %2216 }
 0x2fa   : > { %v2213_v63 = vpop.permute.xlu1 %2212 }
 0x2fb   : > { %v2236_v27 = vsel %vm2235_vm10, %v2234_v45, %v2213_v63 }
 0x2fc   : > { %v2238_v4 = vsel %vm2237_vm11, %v2236_v27, %v2217_v41  ;;  %v2225_v7 = vpop.permute.xlu0 %2224 }
 0x2fe   : > { %v2221_v31 = vpop.permute.xlu1 %2220 }
 0x2ff   : > { %v2240_v50 = vsel %vm2239_vm12, %v2238_v4, %v2221_v31 }
 0x300   : > { %v2242_v3 = vsel %vm2241_vm13, %v2240_v50, %v2225_v7 }
 0x302   : > { %v2229_v28 = vpop.permute.xlu1 %2228 }
 0x303   : > { %v2244_v36 = vsel %vm2243_vm14, %v2242_v3, %v2229_v28 }
 0x304   : > { %2612 = vmatpush3.msk.msra.mxu0 %vm2249_vm15, %v2244_v36 }
 0x305   : > { %2614 = vmatmul.mubr.msk.f32.vlgmr.msra.gmra.mrb[0].mxu0 %vm2245_vm0, %v1837_v0 }
 0x3d8   : > { %v2319_v23 = vpop.f32.mrb[0].mxu0 }
 0x3d9   : > { %2327 = vrot.lane.b32.xlu1 %v2319_v23, %s2846_s21  ;;  %2324 = vrot.lane.b32.xlu0 %v2319_v23, %s2829_s5  ;;  %v2615_v33 = vpop.f32.mrb[1].mxu0  ;;  %s2608_s5 = sshll.u32 %s2813_s12, 10 }
 0x3da   : > { %s4103_s28 = scalar_lea.hbm %s4165_s2, %s2608_s5 }
 0x3dd   : > { %2333 = vrot.lane.b32.xlu1 %v2319_v23, %s2847_s4  ;;  %2330 = vrot.lane.b32.xlu0 %v2319_v23, %s2848_s6 }
 0x3e1   : > { %2339 = vrot.lane.b32.xlu1 %v2319_v23, %s2849_s16  ;;  %2336 = vrot.lane.b32.xlu0 %v2319_v23, %s2850_s18 }
 0x3e5   : > { %2342 = vrot.lane.b32.xlu0 %v2319_v23, %s2851_s19 }
 0x44b   : > { %v2328_v39 = vpop.permute.xlu1 %2327  ;;  %v2325_v6 = vpop.permute.xlu0 %2324 }
 0x44c   : > { %v2345_v35 = vcombine.low %v2319_v23, %v2328_v39  ;;  %v2346_v5 = vcombine.high %v2319_v23, %v2328_v39 }
 0x44e   : > { %v2353_v42 = vrot.slane %v2345_v35, %v4375_v53  ;;  %v2360_v14 = vrot.slane %v2346_v5, %v4375_v53 }
 0x44f   : > { %v2334_v44 = vpop.permute.xlu1 %2333  ;;  %v2331_v38 = vpop.permute.xlu0 %2330 }
 0x450   : > { %v2361_v60 = vcombine.low %v2325_v6, %v2331_v38  ;;  %v2362_v52 = vcombine.high %v2325_v6, %v2331_v38 }
 0x452   : > { %v2369_v48 = vrot.slane %v2361_v60, %v4375_v53  ;;  %v2376_v24 = vrot.slane %v2362_v52, %v4375_v53 }
 0x453   : > { %v2340_v30 = vpop.permute.xlu1 %2339  ;;  %v2337_v61 = vpop.permute.xlu0 %2336 }
 0x454   : > { %v2377_v11 = vcombine.low %v2334_v44, %v2340_v30  ;;  %v2378_v17 = vcombine.high %v2334_v44, %v2340_v30  ;;  %v2409_v56 = vcombine.low %v2353_v42, %v2369_v48  ;;  %v2410_v62 = vcombine.high %v2353_v42, %v2369_v48 }
 0x455   : > { %v2425_v40 = vcombine.low %v2360_v14, %v2376_v24  ;;  %v2426_v22 = vcombine.high %v2360_v14, %v2376_v24 }
 0x456   : > { %v2385_v2 = vrot.slane %v2377_v11, %v4375_v53  ;;  %v2392_v34 = vrot.slane %v2378_v17, %v4375_v53  ;;  %v2417_v10 = vrot.slane %v2409_v56, %v4376_v12  ;;  %v2424_v8 = vrot.slane %v2410_v62, %v4376_v12 }
 0x457   : > { %v2343_v37 = vpop.permute.xlu0 %2342  ;;  %v2440_v49 = vrot.slane %v2426_v22, %v4376_v12 }
 0x458   : > { %v2393_v57 = vcombine.low %v2337_v61, %v2343_v37  ;;  %v2394_v9 = vcombine.high %v2337_v61, %v2343_v37 }
 0x45a   : > { %v2401_v20 = vrot.slane %v2393_v57, %v4375_v53  ;;  %v2408_v26 = vrot.slane %v2394_v9, %v4375_v53  ;;  %v2433_v53 = vrot.slane %v2425_v40, %v4376_v12 }
 0x45c   : > { %v2441_v51 = vcombine.low %v2385_v2, %v2401_v20  ;;  %v2442_v1 = vcombine.high %v2385_v2, %v2401_v20  ;;  %v2457_v47 = vcombine.low %v2392_v34, %v2408_v26  ;;  %v2458_v54 = vcombine.high %v2392_v34, %v2408_v26 }
 0x45e   : > { %v2449_v59 = vrot.slane %v2441_v51, %v4376_v12  ;;  %v2456_v32 = vrot.slane %v2442_v1, %v4376_v12  ;;  %v2465_v18 = vrot.slane %v2457_v47, %v4376_v12  ;;  %v2472_v16 = vrot.slane %v2458_v54, %v4376_v12 }
 0x460   : > { %v2473_v25 = vcombine.low %v2417_v10, %v2449_v59  ;;  %v2474_v55 = vcombine.high %v2417_v10, %v2449_v59  ;;  %v2475_v43 = vcombine.low %v2424_v8, %v2456_v32  ;;  %v2476_v13 = vcombine.high %v2424_v8, %v2456_v32 }
 0x461   : > { %v2477_v29 = vcombine.low %v2433_v53, %v2465_v18  ;;  %v2478_v15 = vcombine.high %v2433_v53, %v2465_v18  ;;  %v2479_v58 = vcombine.low %v2440_v49, %v2472_v16  ;;  %v2480_v19 = vcombine.high %v2440_v49, %v2472_v16 }
 0x462   : > { %2481 = vst.msk [vmem:[%s179_s20] sm:$0xff] %vm2231_vm8, %v2473_v25  ;;  %2482 = vst.msk [vmem:[%s179_s20 + $0x8] sm:$0xff] %vm2231_vm8, %v2474_v55 }
 0x463   : > { %2483 = vst.msk [vmem:[%s179_s20 + $0x10] sm:$0xff] %vm2231_vm8, %v2475_v43  ;;  %2484 = vst.msk [vmem:[%s179_s20 + $0x18] sm:$0xff] %vm2231_vm8, %v2476_v13 }
 0x464   : > { %2485 = vst.msk [vmem:[%s179_s20 + $0x20] sm:$0xff] %vm2231_vm8, %v2477_v29  ;;  %2486 = vst.msk [vmem:[%s179_s20 + $0x28] sm:$0xff] %vm2231_vm8, %v2478_v15 }
 0x465   : > { %2487 = vst.msk [vmem:[%s179_s20 + $0x30] sm:$0xff] %vm2231_vm8, %v2479_v58  ;;  %2488 = vst.msk [vmem:[%s179_s20 + $0x38] sm:$0xff] %vm2231_vm8, %v2480_v19 }
 0x466   : > { %2752 = shalt.err (!%p2749_p5)
}
 0x467   : > { %s2753_s21 = scalar_lea.hbm %s4103_s28, 1024  ;;  %s2757_s16 = scalar_lea.hbm %s4165_s2, 2048 }
 0x468   : > { %p2754_p4 = scmp.ne.s32.totalorder %s4103_s28, %s2753_s21  ;;  %p2758_p12 = scmp.lt.u32.totalorder %s4103_s28, %s4165_s2 }
 0x469   : > { %p2759_p1 = scmp.lt.u32.totalorder %s2757_s16, %s2753_s21  ;;  %p2761_p8 = scmp.lt.u32.totalorder %s2753_s21, %s4103_s28 }
 0x46a   : > { %p2755_p7 = pnand %p2754_p4, %p4377_p9 }
 0x46b   : > { %p2760_p3 = por %p2759_p1, %p2758_p12 }
 0x46c   : > { %p2756_p10 = pneg %p2755_p7 }
 0x46d   : > { %p2762_p11 = por %p2761_p8, %p2760_p3 }
 0x46f   : > { %p2763_p0 = pnand %p2762_p11, %p2756_p10 }
 0x471   : > { %2766 = shalt.err (!%p2763_p0)
}
 0x472   : > { %s2853_s5 = smov 128  }
 0x473   : > { %2618 = dma.vmem_to_hbm [thread:$0]  (%p4377_p9), %s4105_s26, 1024, %s4103_s28, %s2490_s7, %s2853_s5, %s2853_s5, %s2839_s25  }
 0x474 PF: > { %s2519_s20 = sand.u32 1, %s2801_s9   ;;  %p4378_p6 = scmp.ne.s32.totalorder %s4236_s24, 0 }
 0x475   : > { %p4379_p13 = scmp.ge.s32.totalorder %s2821_s14, 2  ;;  %s2520_s12 = scalar_lea.sflag [#allocation4], %s2519_s20 }
 0x477   : > { %p2625_p2 = pnand %p4379_p13, %p4378_p6 }
 0x479   : > { %2796 = dma.done.wait (!%p2625_p2), %s2520_s12, 1024  }
 0x47a   : > { %2798 = vsyncadd (!%p2625_p2), %s2520_s12, 4294966272  ;;  %s18_s14 = sadd.s32 1, %s2821_s14   ;;  %s4380_s9 = smov %s2805_s10 }
 0x47b   : > { %p15_p5 = scmp.ge.s32.totalorder %s18_s14, 4   ;;  %s4381_s10 = smov %s2809_s11 }
 0x47c   : > { %s4382_s11 = smov %s2925_s23  ;;  %s4383_s12 = smov %s2817_s13 }
 0x47d   : > { %s4384_s13 = smov %s4386_s17  ;;  %17 = sbr.rel (!%p15_p5) target bundleno = 6 (0x6), region = 73 }
 0x484   :  { %2525 = vsyncpa [#allocation3], 1 }
 0x485   :  { %2527 = vsyncpa [#allocation3 + $0x1], 1 }
 0x486   :  { %2528 = vsyncpa [#allocation4], 1 }
 0x487   :  { %2530 = vsyncpa [#allocation4 + $0x1], 1 }

</bundles_post_ra>
